<compile_context>
chip_gen: v7x
topology: tpu7x:2x2x1
jax: 0.10.0
libtpu: 0.0.40
codegen_flags: <defaults>
</compile_context>

<pallas_src>
import functools
import math

import jax
import jax.numpy as jnp
from jax.experimental import pallas as pl
from jax.experimental.pallas import tpu as pltpu


# ----------------------------- hardware probes ---------------------------------

def _vmem_limit_bytes():
    """Generation-aware scoped-VMEM budget: ~85% of physical VMEM
    (v5e/v6e: 128 MiB -> ~109 MiB, v7x: 64 MiB -> ~54 MiB)."""
    default_cap = 64 * 1024 * 1024
    try:
        cap = getattr(pltpu.get_tpu_info(), "vmem_capacity_bytes", default_cap)
    except Exception:
        cap = default_cap
    return max(32 * 1024 * 1024, int(cap * 0.85))


def _weight_pipeline_mode():
    """pl.Buffered(1) single-buffers grid-constant weight blocks (halves their
    VMEM vs. the default double buffer).  Probe support with a tiny kernel so
    the script still runs cleanly on builds where pipeline_mode is unavailable."""
    def probe(w_ref, x_ref, o_ref):
        o_ref[...] = x_ref[...] + w_ref[...]

    try:
        mode = pl.Buffered(1)
        f = pl.pallas_call(
            probe,
            out_shape=jax.ShapeDtypeStruct((16, 128), jnp.float32),
            grid=(2, 1),
            in_specs=[
                pl.BlockSpec((8, 128), lambda i, j: (0, 0), pipeline_mode=mode),
                pl.BlockSpec((8, 128), lambda i, j: (i, 0)),
            ],
            out_specs=pl.BlockSpec((8, 128), lambda i, j: (i, 0)),
            compiler_params=pltpu.CompilerParams(
                dimension_semantics=("parallel", "arbitrary")),
        )
        jax.block_until_ready(f(jnp.zeros((8, 128), jnp.float32),
                                jnp.zeros((16, 128), jnp.float32)))
        return mode
    except Exception:
        return None


# ------------------------------ in-kernel helpers -------------------------------

def _ln(x, gamma, beta, eps):
    mu = jnp.mean(x, axis=-1, keepdims=True)
    var = jnp.mean((x - mu) ** 2, axis=-1, keepdims=True)
    return (x - mu) * jax.lax.rsqrt(var + eps) * gamma + beta


def _gelu(x):
    # exact (erf-based) GELU, matching BERT's "gelu".  (tanh approx would be a
    # single EUP push, but we keep erf for parity with the reference.)
    return 0.5 * x * (1.0 + jax.lax.erf(x * (1.0 / math.sqrt(2.0))))


# ------------------------------- Pallas kernels ---------------------------------

def _embed_ln_kernel(x_ref, g_ref, b_ref, o_ref, *, eps):
    o_ref[...] = _ln(x_ref[...], g_ref[...], b_ref[...], eps).astype(o_ref.dtype)


def embed_layernorm(x, gamma, beta, eps=1e-12):
    """LayerNorm over the full [M, H] embedding activation; bf16 output.
    One lane-dense block (memory-bound kernel; tiny row blocks waste BW).
    TODO(synk): tile by 256-1024 rows for very large B*S."""
    M, H = x.shape
    return pl.pallas_call(
        functools.partial(_embed_ln_kernel, eps=eps),
        out_shape=jax.ShapeDtypeStruct((M, H), jnp.bfloat16),
        grid=(1,),
        in_specs=[
            pl.BlockSpec((M, H), lambda i: (0, 0)),
            pl.BlockSpec((1, H), lambda i: (0, 0)),
            pl.BlockSpec((1, H), lambda i: (0, 0)),
        ],
        out_specs=pl.BlockSpec((M, H), lambda i: (0, 0)),
    )(x, gamma, beta)


def _layer_kernel(mask_ref, xq_ref, xkv_ref,
                  wq_ref, wk_ref, wv_ref, bq_ref, bk_ref, bv_ref,
                  wo_ref, bo_ref, ln1g_ref, ln1b_ref,
                  w1_ref, b1_ref, w2_ref, b2_ref, ln2g_ref, ln2b_ref,
                  o_ref, k_sc, v_sc, *, nh, scale, eps):
    f32, bf16 = jnp.float32, jnp.bfloat16
    TQ, H = xq_ref.shape
    S = xkv_ref.shape[0]

    # Additive attention mask, kept [1, 1, S]: broadcasts over heads & q rows.
    m = (1.0 - mask_ref[...]) * -10000.0

    # --- K / V projections (head-batched), computed once per batch row-block ---
    @pl.when(pl.program_id(1) == 0)
    def _():
        xkv = jnp.broadcast_to(xkv_ref[...], (nh, S, H))            # bf16 [NH,S,H]
        k = jnp.einsum('nsh,nhd->nsd', xkv, wk_ref[...],
                       preferred_element_type=f32) + bk_ref[...]
        v = jnp.einsum('nsh,nhd->nsd', xkv, wv_ref[...],
                       preferred_element_type=f32) + bv_ref[...]
        k_sc[...] = k.astype(bf16)
        v_sc[...] = v.astype(bf16)

    # --- Q projection for this row tile; softmax scale folded into q (f32) -----
    xq = xq_ref[...]                                                # bf16 [TQ,H]
    xqh = jnp.broadcast_to(xq, (nh, TQ, H))
    q = (jnp.einsum('nsh,nhd->nsd', xqh, wq_ref[...],
                    preferred_element_type=f32) + bq_ref[...]) * scale

    # --- head-batched attention: single batched contractions, DH contiguous ----
    s = jnp.einsum('nqd,nkd->nqk', q.astype(bf16), k_sc[...],
                   preferred_element_type=f32) + m                  # [NH,TQ,S]
    s = s - jnp.max(s, axis=-1, keepdims=True)
    p = jnp.exp(s)
    p = p * pl.reciprocal(jnp.sum(p, axis=-1, keepdims=True), approx=True)
    ctx = jnp.einsum('nqk,nkd->nqd', p.astype(bf16), v_sc[...],
                     preferred_element_type=f32)                    # [NH,TQ,DH]

    # --- output projection accumulated over heads (no lane concatenation) ------
    attn = jnp.sum(jnp.einsum('nqd,ndh->nqh', ctx.astype(bf16), wo_ref[...],
                              preferred_element_type=f32),
                   axis=0) + bo_ref[...]                            # [TQ,H]

    x1 = _ln(attn + xq.astype(f32), ln1g_ref[...], ln1b_ref[...], eps)

    # --- FFN: dense + GELU(erf), dense + residual + LayerNorm -------------------
    h1 = _gelu(jnp.dot(x1.astype(bf16), w1_ref[...],
                       preferred_element_type=f32) + b1_ref[...])
    h2 = jnp.dot(h1.astype(bf16), w2_ref[...],
                 preferred_element_type=f32) + b2_ref[...]
    o_ref[...] = _ln(h2 + x1, ln2g_ref[...], ln2b_ref[...], eps).astype(o_ref.dtype)


def encoder_layer(x, mask3, lp, cfg, *, vmem_limit, w_mode):
    """One fused BERT encoder layer.  x: [B*S, H] bf16, mask3: [B, 1, S] f32."""
    BS, H = x.shape
    B, _, S = mask3.shape
    NH = cfg["heads"]
    DH = H // NH
    I = lp["w1"].shape[1]

    # Row-tile the queries so each core sees several grid steps (DMA overlap)
    # at production S; K/V for the batch live in VMEM scratch across q-tiles.
    TQ = 128 if S % 128 == 0 else S
    n_q = S // TQ

    def wspec(shape):
        idx = lambda *_: (0,) * len(shape)      # grid-constant block
        if w_mode is None:
            return pl.BlockSpec(shape, idx)
        return pl.BlockSpec(shape, idx, pipeline_mode=w_mode)

    kernel = functools.partial(_layer_kernel, nh=NH,
                               scale=1.0 / math.sqrt(DH), eps=1e-12)
    return pl.pallas_call(
        kernel,
        out_shape=jax.ShapeDtypeStruct((BS, H), jnp.bfloat16),
        grid=(B, n_q),
        in_specs=[
            pl.BlockSpec((1, 1, S), lambda b, q: (b, 0, 0)),        # mask
            pl.BlockSpec((TQ, H), lambda b, q: (b * n_q + q, 0)),   # x (query rows)
            pl.BlockSpec((S, H), lambda b, q: (b, 0)),              # x (K/V rows)
            wspec((NH, H, DH)),                                      # wq
            wspec((NH, H, DH)),                                      # wk
            wspec((NH, H, DH)),                                      # wv
            wspec((NH, 1, DH)),                                      # bq
            wspec((NH, 1, DH)),                                      # bk
            wspec((NH, 1, DH)),                                      # bv
            wspec((NH, DH, H)),                                      # wo
            wspec((1, H)),                                           # bo
            wspec((1, H)), wspec((1, H)),                            # ln1 g/b
            wspec((H, I)), wspec((1, I)),                            # w1, b1
            wspec((I, H)), wspec((1, H)),                            # w2, b2
            wspec((1, H)), wspec((1, H)),                            # ln2 g/b
        ],
        out_specs=pl.BlockSpec((TQ, H), lambda b, q: (b * n_q + q, 0)),
        scratch_shapes=[
            pltpu.VMEM((NH, S, DH), jnp.bfloat16),   # K for current batch block
            pltpu.VMEM((NH, S, DH), jnp.bfloat16),   # V for current batch block
        ],
        compiler_params=pltpu.CompilerParams(
            dimension_semantics=("parallel", "arbitrary"),
            vmem_limit_bytes=vmem_limit),
    )(mask3, x, x,
      lp["wq"], lp["wk"], lp["wv"], lp["bq"], lp["bk"], lp["bv"],
      lp["wo"], lp["bo"], lp["ln1_g"], lp["ln1_b"],
      lp["w1"], lp["b1"], lp["w2"], lp["b2"], lp["ln2_g"], lp["ln2_b"])


def _pooler_kernel(x_ref, w_ref, b_ref, o_ref):
    y = jnp.dot(x_ref[...].astype(jnp.bfloat16), w_ref[...],
                preferred_element_type=jnp.float32) + b_ref[...]
    o_ref[...] = jnp.tanh(y).astype(o_ref.dtype)


def pooler(cls, w, b):
    """tanh(cls @ w + b) on the stacked [B, H] CLS matrix — single call/matmul."""
    B, H = cls.shape
    return pl.pallas_call(
        _pooler_kernel,
        out_shape=jax.ShapeDtypeStruct((B, H), jnp.float32),
        grid=(1,),
        in_specs=[
            pl.BlockSpec((B, H), lambda i: (0, 0)),
            pl.BlockSpec((H, H), lambda i: (0, 0)),
            pl.BlockSpec((1, H), lambda i: (0, 0)),
        ],
        out_specs=pl.BlockSpec((B, H), lambda i: (0, 0)),
    )(cls, w, b)


# ------------------------------- parameter init ---------------------------------

def init_params(key, cfg):
    std = 0.02
    H, I, NH = cfg["hidden"], cfg["intermediate"], cfg["heads"]
    DH = H // NH

    def nxt():
        nonlocal key
        key, sub = jax.random.split(key)
        return sub

    def norm(shape):
        return (std * jax.random.normal(nxt(), shape)).astype(jnp.float32)

    params = {
        "word_emb": norm((cfg["vocab"], H)),
        "pos_emb": norm((cfg["max_pos"], H)),
        "type_emb": norm((cfg["type_vocab"], H)),
        "emb_ln_g": jnp.ones((1, H), jnp.float32),
        "emb_ln_b": jnp.zeros((1, H), jnp.float32),
        "layers": [],
        "pool_w": norm((H, H)).astype(jnp.bfloat16),
        "pool_b": jnp.zeros((1, H), jnp.float32),
    }
    for _ in range(cfg["layers"]):
        wq, wk, wv, wo = norm((H, H)), norm((H, H)), norm((H, H)), norm((H, H))
        params["layers"].append({
            # Head-batched weight layout: [NH, H, DH] / [NH, DH, H] so the kernel
            # never lane-slices heads (reshape/transpose done once, at init).
            "wq": wq.reshape(H, NH, DH).transpose(1, 0, 2).astype(jnp.bfloat16),
            "wk": wk.reshape(H, NH, DH).transpose(1, 0, 2).astype(jnp.bfloat16),
            "wv": wv.reshape(H, NH, DH).transpose(1, 0, 2).astype(jnp.bfloat16),
            "bq": jnp.zeros((NH, 1, DH), jnp.float32),
            "bk": jnp.zeros((NH, 1, DH), jnp.float32),
            "bv": jnp.zeros((NH, 1, DH), jnp.float32),
            "wo": wo.reshape(NH, DH, H).astype(jnp.bfloat16),
            "bo": jnp.zeros((1, H), jnp.float32),
            "ln1_g": jnp.ones((1, H), jnp.float32),
            "ln1_b": jnp.zeros((1, H), jnp.float32),
            "w1": norm((H, I)).astype(jnp.bfloat16),
            "b1": jnp.zeros((1, I), jnp.float32),
            "w2": norm((I, H)).astype(jnp.bfloat16),
            "b2": jnp.zeros((1, H), jnp.float32),
            "ln2_g": jnp.ones((1, H), jnp.float32),
            "ln2_b": jnp.zeros((1, H), jnp.float32),
        })
    return params


# -------------------------------- forward pass -----------------------------------

def text_encoder_forward(params, input_ids, attention_mask, cfg, w_mode, vmem_limit):
    """Returns BERT pooler_output: tanh(W_p @ h[CLS] + b_p), shape [B, H]."""
    B, S = input_ids.shape
    H = cfg["hidden"]

    # Embedding gathers are XLA glue (data-dependent gather, not the hot path).
    # TODO(synk): token_type_ids hard-coded to 0 (single-segment inputs only).
    x = (params["word_emb"][input_ids]
         + params["pos_emb"][:S][None, :, :]
         + params["type_emb"][0][None, None, :])
    x = x.reshape(B * S, H).astype(jnp.float32)
    x = embed_layernorm(x, params["emb_ln_g"], params["emb_ln_b"])   # -> bf16
    # dropout skipped (eval mode)

    # Mask kept compact [B, 1, S]; additive -10000 form computed in-kernel.
    mask3 = attention_mask.astype(jnp.float32).reshape(B, 1, S)

    for lp in params["layers"]:
        x = encoder_layer(x, mask3, lp, cfg, vmem_limit=vmem_limit, w_mode=w_mode)

    # Pooler: dense + tanh on the stacked [CLS] tokens.
    cls = x.reshape(B, S, H)[:, 0, :]                                # [B, H] bf16
    return pooler(cls, params["pool_w"], params["pool_b"])


# ------------------------------------ main ----------------------------------------

if __name__ == "__main__":
    # small synthetic BERT config (vocab matches BertConfig(vocab_size=31090))
    cfg = dict(vocab=31090, hidden=32, heads=4, intermediate=128,
               layers=2, max_pos=64, type_vocab=2)

    key = jax.random.PRNGKey(0)
    pkey, ikey = jax.random.split(key)
    params = init_params(pkey, cfg)

    B, S = 2, 8
    input_ids = jax.random.randint(ikey, (B, S), 0, cfg["vocab"], dtype=jnp.int32)
    attention_mask = jnp.ones((B, S), jnp.int32).at[1, 6:].set(0)

    w_mode = _weight_pipeline_mode()      # pl.Buffered(1) if supported, else None
    vmem_limit = _vmem_limit_bytes()      # generation-aware scoped-VMEM budget

    fwd = jax.jit(functools.partial(text_encoder_forward, cfg=cfg,
                                    w_mode=w_mode, vmem_limit=vmem_limit))
    out = jax.block_until_ready(fwd(params, input_ids, attention_mask))

    assert out.shape == (B, cfg["hidden"]), out.shape
    assert bool(jnp.all(jnp.isfinite(out)))
    print("KERNEL_OK")
</pallas_src>

<mosaic_0001>
module attributes {stable_mosaic.version = 11 : i64} {
  func.func @probe(%arg0: i32, %arg1: i32, %arg2: memref<8x128xf32, #tpu.memory_space<vmem>>, %arg3: memref<8x128xf32, #tpu.memory_space<vmem>>, %arg4: memref<8x128xf32, #tpu.memory_space<vmem>>) attributes {dimension_semantics = [#tpu.dimension_semantics<parallel>, #tpu.dimension_semantics<arbitrary>], iteration_bounds = array<i64: 2, 1>, scalar_prefetch = 0 : i64, scratch_operands = 0 : i64, tpu.core_type = #tpu.core_type<tc>, window_params = [{pipeline_mode = #tpu.pipeline_mode<synchronous>, transform_indices = @transform_0, window_bounds = array<i64: 8, 128>}, {transform_indices = @transform_1, window_bounds = array<i64: 8, 128>}, {transform_indices = @transform_2, window_bounds = array<i64: 8, 128>}]} {
    %c0 = arith.constant 0 : index
    %c0_0 = arith.constant 0 : index
    %0 = vector.load %arg3[%c0, %c0_0] : memref<8x128xf32, #tpu.memory_space<vmem>>, vector<8x128xf32>
    %c0_1 = arith.constant 0 : index
    %c0_2 = arith.constant 0 : index
    %1 = vector.load %arg2[%c0_1, %c0_2] : memref<8x128xf32, #tpu.memory_space<vmem>>, vector<8x128xf32>
    %2 = arith.addf %0, %1 : vector<8x128xf32>
    %c0_3 = arith.constant 0 : index
    %c0_4 = arith.constant 0 : index
    %3 = vector.load %arg4[%c0_3, %c0_4] : memref<8x128xf32, #tpu.memory_space<vmem>>, vector<8x128xf32>
    tpu.vector_store %arg4[%c0_3, %c0_4], %2 {strides = array<i32>} : memref<8x128xf32, #tpu.memory_space<vmem>>, vector<8x128xf32>,
    return
  }
  func.func @transform_0(%arg0: i32, %arg1: i32) -> (i32, i32) {
    %c0_i32 = arith.constant 0 : i32
    %c0_i32_0 = arith.constant 0 : i32
    %c0_i32_1 = arith.constant 0 : i32
    return %c0_i32, %c0_i32_0 : i32, i32
  }
  func.func @transform_1(%arg0: i32, %arg1: i32) -> (i32, i32) {
    %c0_i32 = arith.constant 0 : i32
    %c0_i32_0 = arith.constant 0 : i32
    return %arg0, %c0_i32 : i32, i32
  }
  func.func @transform_2(%arg0: i32, %arg1: i32) -> (i32, i32) {
    %c0_i32 = arith.constant 0 : i32
    %c0_i32_0 = arith.constant 0 : i32
    return %arg0, %c0_i32 : i32, i32
  }
}

module attributes {stable_mosaic.version = 11 : i64} {
  func.func @_embed_ln_kernel(%arg0: i32, %arg1: memref<16x32xf32, #tpu.memory_space<vmem>>, %arg2: memref<1x32xf32, #tpu.memory_space<vmem>>, %arg3: memref<1x32xf32, #tpu.memory_space<vmem>>, %arg4: memref<16x32xbf16, #tpu.memory_space<vmem>>) attributes {dimension_semantics = [#tpu.dimension_semantics<arbitrary>], iteration_bounds = array<i64: 1>, scalar_prefetch = 0 : i64, scratch_operands = 0 : i64, tpu.core_type = #tpu.core_type<tc>, window_params = [{pipeline_mode = #tpu.pipeline_mode<synchronous>, transform_indices = @transform_0, window_bounds = array<i64: 16, 32>}, {pipeline_mode = #tpu.pipeline_mode<synchronous>, transform_indices = @transform_1, window_bounds = array<i64: 1, 32>}, {pipeline_mode = #tpu.pipeline_mode<synchronous>, transform_indices = @transform_2, window_bounds = array<i64: 1, 32>}, {pipeline_mode = #tpu.pipeline_mode<synchronous>, transform_indices = @transform_3, window_bounds = array<i64: 16, 32>}]} {
    %c0 = arith.constant 0 : index
    %c0_0 = arith.constant 0 : index
    %0 = vector.load %arg1[%c0, %c0_0] : memref<16x32xf32, #tpu.memory_space<vmem>>, vector<16x32xf32>
    %c0_1 = arith.constant 0 : index
    %c0_2 = arith.constant 0 : index
    %1 = vector.load %arg2[%c0_1, %c0_2] : memref<1x32xf32, #tpu.memory_space<vmem>>, vector<1x32xf32>
    %c0_3 = arith.constant 0 : index
    %c0_4 = arith.constant 0 : index
    %2 = vector.load %arg3[%c0_3, %c0_4] : memref<1x32xf32, #tpu.memory_space<vmem>>, vector<1x32xf32>
    %cst = arith.constant dense<0.000000e+00> : vector<16xf32>
    %3 = vector.multi_reduction <add>, %0, %cst [1] : vector<16x32xf32> to vector<16xf32>
    %4 = vector.shape_cast %3 : vector<16xf32> to vector<16x1xf32>
    %cst_5 = arith.constant 3.200000e+01 : f32
    %5 = vector.broadcast %cst_5 : f32 to vector<16x1xf32>
    %6 = arith.divf %4, %5 : vector<16x1xf32>
    %7 = vector.broadcast %6 : vector<16x1xf32> to vector<16x32xf32>
    %8 = arith.subf %0, %7 : vector<16x32xf32>
    %9 = arith.mulf %8, %8 : vector<16x32xf32>
    %cst_6 = arith.constant dense<0.000000e+00> : vector<16xf32>
    %10 = vector.multi_reduction <add>, %9, %cst_6 [1] : vector<16x32xf32> to vector<16xf32>
    %11 = vector.shape_cast %10 : vector<16xf32> to vector<16x1xf32>
    %cst_7 = arith.constant 3.200000e+01 : f32
    %12 = vector.broadcast %cst_7 : f32 to vector<16x1xf32>
    %13 = arith.divf %11, %12 : vector<16x1xf32>
    %14 = vector.broadcast %6 : vector<16x1xf32> to vector<16x32xf32>
    %15 = arith.subf %0, %14 : vector<16x32xf32>
    %cst_8 = arith.constant 9.99999996E-13 : f32
    %16 = vector.broadcast %cst_8 : f32 to vector<16x1xf32>
    %17 = arith.addf %13, %16 : vector<16x1xf32>
    %18 = math.rsqrt %17 : vector<16x1xf32>
    %19 = vector.broadcast %18 : vector<16x1xf32> to vector<16x32xf32>
    %20 = arith.mulf %15, %19 : vector<16x32xf32>
    %21 = vector.broadcast %1 : vector<1x32xf32> to vector<16x32xf32>
    %22 = arith.mulf %20, %21 : vector<16x32xf32>
    %23 = vector.broadcast %2 : vector<1x32xf32> to vector<16x32xf32>
    %24 = arith.addf %22, %23 : vector<16x32xf32>
    %25 = arith.truncf %24 : vector<16x32xf32> to vector<16x32xbf16>
    %c0_9 = arith.constant 0 : index
    %c0_10 = arith.constant 0 : index
    %26 = vector.load %arg4[%c0_9, %c0_10] : memref<16x32xbf16, #tpu.memory_space<vmem>>, vector<16x32xbf16>
    tpu.vector_store %arg4[%c0_9, %c0_10], %25 {strides = array<i32>} : memref<16x32xbf16, #tpu.memory_space<vmem>>, vector<16x32xbf16>,
    return
  }
  func.func @transform_0(%arg0: i32) -> (i32, i32) {
    %c0_i32 = arith.constant 0 : i32
    %c0_i32_0 = arith.constant 0 : i32
    %c0_i32_1 = arith.constant 0 : i32
    return %c0_i32, %c0_i32_0 : i32, i32
  }
  func.func @transform_1(%arg0: i32) -> (i32, i32) {
    %c0_i32 = arith.constant 0 : i32
    %c0_i32_0 = arith.constant 0 : i32
    %c0_i32_1 = arith.constant 0 : i32
    return %c0_i32, %c0_i32_0 : i32, i32
  }
  func.func @transform_2(%arg0: i32) -> (i32, i32) {
    %c0_i32 = arith.constant 0 : i32
    %c0_i32_0 = arith.constant 0 : i32
    %c0_i32_1 = arith.constant 0 : i32
    return %c0_i32, %c0_i32_0 : i32, i32
  }
  func.func @transform_3(%arg0: i32) -> (i32, i32) {
    %c0_i32 = arith.constant 0 : i32
    %c0_i32_0 = arith.constant 0 : i32
    %c0_i32_1 = arith.constant 0 : i32
    return %c0_i32, %c0_i32_0 : i32, i32
  }
}

module attributes {stable_mosaic.version = 11 : i64} {
  func.func @_layer_kernel(%arg0: i32, %arg1: i32, %arg2: memref<1x1x8xf32, #tpu.memory_space<vmem>>, %arg3: memref<8x32xbf16, #tpu.memory_space<vmem>>, %arg4: memref<8x32xbf16, #tpu.memory_space<vmem>>, %arg5: memref<4x32x8xbf16, #tpu.memory_space<vmem>>, %arg6: memref<4x32x8xbf16, #tpu.memory_space<vmem>>, %arg7: memref<4x32x8xbf16, #tpu.memory_space<vmem>>, %arg8: memref<4x1x8xf32, #tpu.memory_space<vmem>>, %arg9: memref<4x1x8xf32, #tpu.memory_space<vmem>>, %arg10: memref<4x1x8xf32, #tpu.memory_space<vmem>>, %arg11: memref<4x8x32xbf16, #tpu.memory_space<vmem>>, %arg12: memref<1x32xf32, #tpu.memory_space<vmem>>, %arg13: memref<1x32xf32, #tpu.memory_space<vmem>>, %arg14: memref<1x32xf32, #tpu.memory_space<vmem>>, %arg15: memref<32x128xbf16, #tpu.memory_space<vmem>>, %arg16: memref<1x128xf32, #tpu.memory_space<vmem>>, %arg17: memref<128x32xbf16, #tpu.memory_space<vmem>>, %arg18: memref<1x32xf32, #tpu.memory_space<vmem>>, %arg19: memref<1x32xf32, #tpu.memory_space<vmem>>, %arg20: memref<1x32xf32, #tpu.memory_space<vmem>>, %arg21: memref<8x32xbf16, #tpu.memory_space<vmem>>, %arg22: memref<4x8x8xbf16, #tpu.memory_space<vmem>>, %arg23: memref<4x8x8xbf16, #tpu.memory_space<vmem>>) attributes {dimension_semantics = [#tpu.dimension_semantics<parallel>, #tpu.dimension_semantics<arbitrary>], iteration_bounds = array<i64: 2, 1>, scalar_prefetch = 0 : i64, scratch_operands = 2 : i64, tpu.core_type = #tpu.core_type<tc>, window_params = [{transform_indices = @transform_0, window_bounds = array<i64: 1, 1, 8>}, {transform_indices = @transform_1, window_bounds = array<i64: 8, 32>}, {transform_indices = @transform_2, window_bounds = array<i64: 8, 32>}, {pipeline_mode = #tpu.pipeline_mode<synchronous>, transform_indices = @transform_3, window_bounds = array<i64: 4, 32, 8>}, {pipeline_mode = #tpu.pipeline_mode<synchronous>, transform_indices = @transform_4, window_bounds = array<i64: 4, 32, 8>}, {pipeline_mode = #tpu.pipeline_mode<synchronous>, transform_indices = @transform_5, window_bounds = array<i64: 4, 32, 8>}, {pipeline_mode = #tpu.pipeline_mode<synchronous>, transform_indices = @transform_6, window_bounds = array<i64: 4, 1, 8>}, {pipeline_mode = #tpu.pipeline_mode<synchronous>, transform_indices = @transform_7, window_bounds = array<i64: 4, 1, 8>}, {pipeline_mode = #tpu.pipeline_mode<synchronous>, transform_indices = @transform_8, window_bounds = array<i64: 4, 1, 8>}, {pipeline_mode = #tpu.pipeline_mode<synchronous>, transform_indices = @transform_9, window_bounds = array<i64: 4, 8, 32>}, {pipeline_mode = #tpu.pipeline_mode<synchronous>, transform_indices = @transform_10, window_bounds = array<i64: 1, 32>}, {pipeline_mode = #tpu.pipeline_mode<synchronous>, transform_indices = @transform_11, window_bounds = array<i64: 1, 32>}, {pipeline_mode = #tpu.pipeline_mode<synchronous>, transform_indices = @transform_12, window_bounds = array<i64: 1, 32>}, {pipeline_mode = #tpu.pipeline_mode<synchronous>, transform_indices = @transform_13, window_bounds = array<i64: 32, 128>}, {pipeline_mode = #tpu.pipeline_mode<synchronous>, transform_indices = @transform_14, window_bounds = array<i64: 1, 128>}, {pipeline_mode = #tpu.pipeline_mode<synchronous>, transform_indices = @transform_15, window_bounds = array<i64: 128, 32>}, {pipeline_mode = #tpu.pipeline_mode<synchronous>, transform_indices = @transform_16, window_bounds = array<i64: 1, 32>}, {pipeline_mode = #tpu.pipeline_mode<synchronous>, transform_indices = @transform_17, window_bounds = array<i64: 1, 32>}, {pipeline_mode = #tpu.pipeline_mode<synchronous>, transform_indices = @transform_18, window_bounds = array<i64: 1, 32>}, {transform_indices = @transform_19, window_bounds = array<i64: 8, 32>}]} {
    %c0 = arith.constant 0 : index
    %c0_0 = arith.constant 0 : index
    %c0_1 = arith.constant 0 : index
    %0 = vector.load %arg2[%c0, %c0_0, %c0_1] : memref<1x1x8xf32, #tpu.memory_space<vmem>>, vector<1x1x8xf32>
    %cst = arith.constant 1.000000e+00 : f32
    %1 = vector.broadcast %cst : f32 to vector<1x1x8xf32>
    %2 = arith.subf %1, %0 : vector<1x1x8xf32>
    %cst_2 = arith.constant -1.000000e+04 : f32
    %3 = vector.broadcast %cst_2 : f32 to vector<1x1x8xf32>
    %4 = arith.mulf %2, %3 : vector<1x1x8xf32>
    %c0_i32 = arith.constant 0 : i32
    %5 = arith.cmpi eq, %arg1, %c0_i32 : i32
    %6 = arith.extui %5 : i1 to i32
    %c0_i32_3 = arith.constant 0 : i32
    %7 = arith.cmpi ne, %6, %c0_i32_3 : i32
    scf.if %7 {
      %c0_64 = arith.constant 0 : index
      %c0_65 = arith.constant 0 : index
      %116 = vector.load %arg4[%c0_64, %c0_65] : memref<8x32xbf16, #tpu.memory_space<vmem>>, vector<8x32xbf16>
      %117 = vector.shape_cast %116 : vector<8x32xbf16> to vector<1x8x32xbf16>
      %118 = vector.broadcast %117 : vector<1x8x32xbf16> to vector<4x8x32xbf16>
      %c0_66 = arith.constant 0 : index
      %c0_67 = arith.constant 0 : index
      %c0_68 = arith.constant 0 : index
      %119 = vector.load %arg6[%c0_66, %c0_67, %c0_68] : memref<4x32x8xbf16, #tpu.memory_space<vmem>>, vector<4x32x8xbf16>
      "tpu.trace_start"() <{level = 10 : i32, message = "nsh,nhd->nsd"}> : () -> ()
      %cst_69 = arith.constant dense<0.000000e+00> : vector<4x8x8xf32>
      %120 = tpu.matmul %118, %119, %cst_69 {dimension_numbers = #tpu.dot_dimension_numbers<[2], [1], [1], [2], [0, 0, 0, 1, 1, 2], [0], [0]>} : vector<4x8x32xbf16>, vector<4x32x8xbf16>, vector<4x8x8xf32> -> vector<4x8x8xf32>
      "tpu.trace_stop"() : () -> ()
      %c0_70 = arith.constant 0 : index
      %c0_71 = arith.constant 0 : index
      %c0_72 = arith.constant 0 : index
      %121 = vector.load %arg9[%c0_70, %c0_71, %c0_72] : memref<4x1x8xf32, #tpu.memory_space<vmem>>, vector<4x1x8xf32>
      %122 = vector.broadcast %121 : vector<4x1x8xf32> to vector<4x8x8xf32>
      %123 = arith.addf %120, %122 : vector<4x8x8xf32>
      %c0_73 = arith.constant 0 : index
      %c0_74 = arith.constant 0 : index
      %c0_75 = arith.constant 0 : index
      %124 = vector.load %arg7[%c0_73, %c0_74, %c0_75] : memref<4x32x8xbf16, #tpu.memory_space<vmem>>, vector<4x32x8xbf16>
      "tpu.trace_start"() <{level = 10 : i32, message = "nsh,nhd->nsd"}> : () -> ()
      %cst_76 = arith.constant dense<0.000000e+00> : vector<4x8x8xf32>
      %125 = tpu.matmul %118, %124, %cst_76 {dimension_numbers = #tpu.dot_dimension_numbers<[2], [1], [1], [2], [0, 0, 0, 1, 1, 2], [0], [0]>} : vector<4x8x32xbf16>, vector<4x32x8xbf16>, vector<4x8x8xf32> -> vector<4x8x8xf32>
      "tpu.trace_stop"() : () -> ()
      %c0_77 = arith.constant 0 : index
      %c0_78 = arith.constant 0 : index
      %c0_79 = arith.constant 0 : index
      %126 = vector.load %arg10[%c0_77, %c0_78, %c0_79] : memref<4x1x8xf32, #tpu.memory_space<vmem>>, vector<4x1x8xf32>
      %127 = vector.broadcast %126 : vector<4x1x8xf32> to vector<4x8x8xf32>
      %128 = arith.addf %125, %127 : vector<4x8x8xf32>
      %129 = arith.truncf %123 : vector<4x8x8xf32> to vector<4x8x8xbf16>
      %c0_80 = arith.constant 0 : index
      %c0_81 = arith.constant 0 : index
      %c0_82 = arith.constant 0 : index
      %130 = vector.load %arg22[%c0_80, %c0_81, %c0_82] : memref<4x8x8xbf16, #tpu.memory_space<vmem>>, vector<4x8x8xbf16>
      tpu.vector_store %arg22[%c0_80, %c0_81, %c0_82], %129 {strides = array<i32>} : memref<4x8x8xbf16, #tpu.memory_space<vmem>>, vector<4x8x8xbf16>,
      %131 = arith.truncf %128 : vector<4x8x8xf32> to vector<4x8x8xbf16>
      %c0_83 = arith.constant 0 : index
      %c0_84 = arith.constant 0 : index
      %c0_85 = arith.constant 0 : index
      %132 = vector.load %arg23[%c0_83, %c0_84, %c0_85] : memref<4x8x8xbf16, #tpu.memory_space<vmem>>, vector<4x8x8xbf16>
      tpu.vector_store %arg23[%c0_83, %c0_84, %c0_85], %131 {strides = array<i32>} : memref<4x8x8xbf16, #tpu.memory_space<vmem>>, vector<4x8x8xbf16>,
    } else {
    }
    %c0_4 = arith.constant 0 : index
    %c0_5 = arith.constant 0 : index
    %8 = vector.load %arg3[%c0_4, %c0_5] : memref<8x32xbf16, #tpu.memory_space<vmem>>, vector<8x32xbf16>
    %9 = vector.shape_cast %8 : vector<8x32xbf16> to vector<1x8x32xbf16>
    %10 = vector.broadcast %9 : vector<1x8x32xbf16> to vector<4x8x32xbf16>
    %c0_6 = arith.constant 0 : index
    %c0_7 = arith.constant 0 : index
    %c0_8 = arith.constant 0 : index
    %11 = vector.load %arg5[%c0_6, %c0_7, %c0_8] : memref<4x32x8xbf16, #tpu.memory_space<vmem>>, vector<4x32x8xbf16>
    "tpu.trace_start"() <{level = 10 : i32, message = "nsh,nhd->nsd"}> : () -> ()
    %cst_9 = arith.constant dense<0.000000e+00> : vector<4x8x8xf32>
    %12 = tpu.matmul %10, %11, %cst_9 {dimension_numbers = #tpu.dot_dimension_numbers<[2], [1], [1], [2], [0, 0, 0, 1, 1, 2], [0], [0]>} : vector<4x8x32xbf16>, vector<4x32x8xbf16>, vector<4x8x8xf32> -> vector<4x8x8xf32>
    "tpu.trace_stop"() : () -> ()
    %c0_10 = arith.constant 0 : index
    %c0_11 = arith.constant 0 : index
    %c0_12 = arith.constant 0 : index
    %13 = vector.load %arg8[%c0_10, %c0_11, %c0_12] : memref<4x1x8xf32, #tpu.memory_space<vmem>>, vector<4x1x8xf32>
    %14 = vector.broadcast %13 : vector<4x1x8xf32> to vector<4x8x8xf32>
    %15 = arith.addf %12, %14 : vector<4x8x8xf32>
    %cst_13 = arith.constant 0.353553385 : f32
    %16 = vector.broadcast %cst_13 : f32 to vector<4x8x8xf32>
    %17 = arith.mulf %15, %16 : vector<4x8x8xf32>
    %18 = arith.truncf %17 : vector<4x8x8xf32> to vector<4x8x8xbf16>
    %c0_14 = arith.constant 0 : index
    %c0_15 = arith.constant 0 : index
    %c0_16 = arith.constant 0 : index
    %19 = vector.load %arg22[%c0_14, %c0_15, %c0_16] : memref<4x8x8xbf16, #tpu.memory_space<vmem>>, vector<4x8x8xbf16>
    "tpu.trace_start"() <{level = 10 : i32, message = "nqd,nkd->nqk"}> : () -> ()
    %cst_17 = arith.constant dense<0.000000e+00> : vector<4x8x8xf32>
    %20 = tpu.matmul %18, %19, %cst_17 {dimension_numbers = #tpu.dot_dimension_numbers<[2], [2], [1], [1], [0, 0, 0, 1, 1, 1], [0], [0]>} : vector<4x8x8xbf16>, vector<4x8x8xbf16>, vector<4x8x8xf32> -> vector<4x8x8xf32>
    "tpu.trace_stop"() : () -> ()
    %21 = vector.broadcast %4 : vector<1x1x8xf32> to vector<4x8x8xf32>
    %22 = arith.addf %20, %21 : vector<4x8x8xf32>
    %cst_18 = arith.constant dense<0xFF800000> : vector<4x8xf32>
    %23 = vector.multi_reduction <maximumf>, %22, %cst_18 [2] : vector<4x8x8xf32> to vector<4x8xf32>
    %24 = vector.shape_cast %23 : vector<4x8xf32> to vector<4x8x1xf32>
    %25 = vector.broadcast %24 : vector<4x8x1xf32> to vector<4x8x8xf32>
    %26 = arith.subf %22, %25 : vector<4x8x8xf32>
    %27 = math.exp %26 : vector<4x8x8xf32>
    %cst_19 = arith.constant dense<0.000000e+00> : vector<4x8xf32>
    %28 = vector.multi_reduction <add>, %27, %cst_19 [2] : vector<4x8x8xf32> to vector<4x8xf32>
    %29 = vector.shape_cast %28 : vector<4x8xf32> to vector<4x8x1xf32>
    %30 = tpu.reciprocal %29 {approx = true} : vector<4x8x1xf32> -> vector<4x8x1xf32>
    %31 = vector.broadcast %30 : vector<4x8x1xf32> to vector<4x8x8xf32>
    %32 = arith.mulf %27, %31 : vector<4x8x8xf32>
    %33 = arith.truncf %32 : vector<4x8x8xf32> to vector<4x8x8xbf16>
    %c0_20 = arith.constant 0 : index
    %c0_21 = arith.constant 0 : index
    %c0_22 = arith.constant 0 : index
    %34 = vector.load %arg23[%c0_20, %c0_21, %c0_22] : memref<4x8x8xbf16, #tpu.memory_space<vmem>>, vector<4x8x8xbf16>
    "tpu.trace_start"() <{level = 10 : i32, message = "nqk,nkd->nqd"}> : () -> ()
    %cst_23 = arith.constant dense<0.000000e+00> : vector<4x8x8xf32>
    %35 = tpu.matmul %33, %34, %cst_23 {dimension_numbers = #tpu.dot_dimension_numbers<[2], [1], [1], [2], [0, 0, 0, 1, 1, 2], [0], [0]>} : vector<4x8x8xbf16>, vector<4x8x8xbf16>, vector<4x8x8xf32> -> vector<4x8x8xf32>
    "tpu.trace_stop"() : () -> ()
    %36 = arith.truncf %35 : vector<4x8x8xf32> to vector<4x8x8xbf16>
    %c0_24 = arith.constant 0 : index
    %c0_25 = arith.constant 0 : index
    %c0_26 = arith.constant 0 : index
    %37 = vector.load %arg11[%c0_24, %c0_25, %c0_26] : memref<4x8x32xbf16, #tpu.memory_space<vmem>>, vector<4x8x32xbf16>
    "tpu.trace_start"() <{level = 10 : i32, message = "nqd,ndh->nqh"}> : () -> ()
    %cst_27 = arith.constant dense<0.000000e+00> : vector<4x8x32xf32>
    %38 = tpu.matmul %36, %37, %cst_27 {dimension_numbers = #tpu.dot_dimension_numbers<[2], [1], [1], [2], [0, 0, 0, 1, 1, 2], [0], [0]>} : vector<4x8x8xbf16>, vector<4x8x32xbf16>, vector<4x8x32xf32> -> vector<4x8x32xf32>
    "tpu.trace_stop"() : () -> ()
    %cst_28 = arith.constant dense<0.000000e+00> : vector<8x32xf32>
    %39 = vector.multi_reduction <add>, %38, %cst_28 [0] : vector<4x8x32xf32> to vector<8x32xf32>
    %c0_29 = arith.constant 0 : index
    %c0_30 = arith.constant 0 : index
    %40 = vector.load %arg12[%c0_29, %c0_30] : memref<1x32xf32, #tpu.memory_space<vmem>>, vector<1x32xf32>
    %41 = vector.broadcast %40 : vector<1x32xf32> to vector<8x32xf32>
    %42 = arith.addf %39, %41 : vector<8x32xf32>
    %43 = arith.extf %8 : vector<8x32xbf16> to vector<8x32xf32>
    %44 = arith.addf %42, %43 : vector<8x32xf32>
    %c0_31 = arith.constant 0 : index
    %c0_32 = arith.constant 0 : index
    %45 = vector.load %arg13[%c0_31, %c0_32] : memref<1x32xf32, #tpu.memory_space<vmem>>, vector<1x32xf32>
    %c0_33 = arith.constant 0 : index
    %c0_34 = arith.constant 0 : index
    %46 = vector.load %arg14[%c0_33, %c0_34] : memref<1x32xf32, #tpu.memory_space<vmem>>, vector<1x32xf32>
    %cst_35 = arith.constant dense<0.000000e+00> : vector<8xf32>
    %47 = vector.multi_reduction <add>, %44, %cst_35 [1] : vector<8x32xf32> to vector<8xf32>
    %48 = vector.shape_cast %47 : vector<8xf32> to vector<8x1xf32>
    %cst_36 = arith.constant 3.200000e+01 : f32
    %49 = vector.broadcast %cst_36 : f32 to vector<8x1xf32>
    %50 = arith.divf %48, %49 : vector<8x1xf32>
    %51 = vector.broadcast %50 : vector<8x1xf32> to vector<8x32xf32>
    %52 = arith.subf %44, %51 : vector<8x32xf32>
    %53 = arith.mulf %52, %52 : vector<8x32xf32>
    %cst_37 = arith.constant dense<0.000000e+00> : vector<8xf32>
    %54 = vector.multi_reduction <add>, %53, %cst_37 [1] : vector<8x32xf32> to vector<8xf32>
    %55 = vector.shape_cast %54 : vector<8xf32> to vector<8x1xf32>
    %cst_38 = arith.constant 3.200000e+01 : f32
    %56 = vector.broadcast %cst_38 : f32 to vector<8x1xf32>
    %57 = arith.divf %55, %56 : vector<8x1xf32>
    %58 = vector.broadcast %50 : vector<8x1xf32> to vector<8x32xf32>
    %59 = arith.subf %44, %58 : vector<8x32xf32>
    %cst_39 = arith.constant 9.99999996E-13 : f32
    %60 = vector.broadcast %cst_39 : f32 to vector<8x1xf32>
    %61 = arith.addf %57, %60 : vector<8x1xf32>
    %62 = math.rsqrt %61 : vector<8x1xf32>
    %63 = vector.broadcast %62 : vector<8x1xf32> to vector<8x32xf32>
    %64 = arith.mulf %59, %63 : vector<8x32xf32>
    %65 = vector.broadcast %45 : vector<1x32xf32> to vector<8x32xf32>
    %66 = arith.mulf %64, %65 : vector<8x32xf32>
    %67 = vector.broadcast %46 : vector<1x32xf32> to vector<8x32xf32>
    %68 = arith.addf %66, %67 : vector<8x32xf32>
    %69 = arith.truncf %68 : vector<8x32xf32> to vector<8x32xbf16>
    %c0_40 = arith.constant 0 : index
    %c0_41 = arith.constant 0 : index
    %70 = vector.load %arg15[%c0_40, %c0_41] : memref<32x128xbf16, #tpu.memory_space<vmem>>, vector<32x128xbf16>
    %cst_42 = arith.constant dense<0.000000e+00> : vector<8x128xf32>
    %71 = tpu.matmul %69, %70, %cst_42 {dimension_numbers = #tpu.dot_dimension_numbers<[1], [0], [0], [1], [0, 0, 1, 1], [], []>} : vector<8x32xbf16>, vector<32x128xbf16>, vector<8x128xf32> -> vector<8x128xf32>
    %c0_43 = arith.constant 0 : index
    %c0_44 = arith.constant 0 : index
    %72 = vector.load %arg16[%c0_43, %c0_44] : memref<1x128xf32, #tpu.memory_space<vmem>>, vector<1x128xf32>
    %73 = vector.broadcast %72 : vector<1x128xf32> to vector<8x128xf32>
    %74 = arith.addf %71, %73 : vector<8x128xf32>
    %cst_45 = arith.constant 5.000000e-01 : f32
    %75 = vector.broadcast %cst_45 : f32 to vector<8x128xf32>
    %76 = arith.mulf %75, %74 : vector<8x128xf32>
    %cst_46 = arith.constant 0.707106769 : f32
    %77 = vector.broadcast %cst_46 : f32 to vector<8x128xf32>
    %78 = arith.mulf %74, %77 : vector<8x128xf32>
    %79 = math.erf %78 : vector<8x128xf32>
    %cst_47 = arith.constant 1.000000e+00 : f32
    %80 = vector.broadcast %cst_47 : f32 to vector<8x128xf32>
    %81 = arith.addf %80, %79 : vector<8x128xf32>
    %82 = arith.mulf %76, %81 : vector<8x128xf32>
    %83 = arith.truncf %82 : vector<8x128xf32> to vector<8x128xbf16>
    %c0_48 = arith.constant 0 : index
    %c0_49 = arith.constant 0 : index
    %84 = vector.load %arg17[%c0_48, %c0_49] : memref<128x32xbf16, #tpu.memory_space<vmem>>, vector<128x32xbf16>
    %cst_50 = arith.constant dense<0.000000e+00> : vector<8x32xf32>
    %85 = tpu.matmul %83, %84, %cst_50 {dimension_numbers = #tpu.dot_dimension_numbers<[1], [0], [0], [1], [0, 0, 1, 1], [], []>} : vector<8x128xbf16>, vector<128x32xbf16>, vector<8x32xf32> -> vector<8x32xf32>
    %c0_51 = arith.constant 0 : index
    %c0_52 = arith.constant 0 : index
    %86 = vector.load %arg18[%c0_51, %c0_52] : memref<1x32xf32, #tpu.memory_space<vmem>>, vector<1x32xf32>
    %87 = vector.broadcast %86 : vector<1x32xf32> to vector<8x32xf32>
    %88 = arith.addf %85, %87 : vector<8x32xf32>
    %89 = arith.addf %88, %68 : vector<8x32xf32>
    %c0_53 = arith.constant 0 : index
    %c0_54 = arith.constant 0 : index
    %90 = vector.load %arg19[%c0_53, %c0_54] : memref<1x32xf32, #tpu.memory_space<vmem>>, vector<1x32xf32>
    %c0_55 = arith.constant 0 : index
    %c0_56 = arith.constant 0 : index
    %91 = vector.load %arg20[%c0_55, %c0_56] : memref<1x32xf32, #tpu.memory_space<vmem>>, vector<1x32xf32>
    %cst_57 = arith.constant dense<0.000000e+00> : vector<8xf32>
    %92 = vector.multi_reduction <add>, %89, %cst_57 [1] : vector<8x32xf32> to vector<8xf32>
    %93 = vector.shape_cast %92 : vector<8xf32> to vector<8x1xf32>
    %cst_58 = arith.constant 3.200000e+01 : f32
    %94 = vector.broadcast %cst_58 : f32 to vector<8x1xf32>
    %95 = arith.divf %93, %94 : vector<8x1xf32>
    %96 = vector.broadcast %95 : vector<8x1xf32> to vector<8x32xf32>
    %97 = arith.subf %89, %96 : vector<8x32xf32>
    %98 = arith.mulf %97, %97 : vector<8x32xf32>
    %cst_59 = arith.constant dense<0.000000e+00> : vector<8xf32>
    %99 = vector.multi_reduction <add>, %98, %cst_59 [1] : vector<8x32xf32> to vector<8xf32>
    %100 = vector.shape_cast %99 : vector<8xf32> to vector<8x1xf32>
    %cst_60 = arith.constant 3.200000e+01 : f32
    %101 = vector.broadcast %cst_60 : f32 to vector<8x1xf32>
    %102 = arith.divf %100, %101 : vector<8x1xf32>
    %103 = vector.broadcast %95 : vector<8x1xf32> to vector<8x32xf32>
    %104 = arith.subf %89, %103 : vector<8x32xf32>
    %cst_61 = arith.constant 9.99999996E-13 : f32
    %105 = vector.broadcast %cst_61 : f32 to vector<8x1xf32>
    %106 = arith.addf %102, %105 : vector<8x1xf32>
    %107 = math.rsqrt %106 : vector<8x1xf32>
    %108 = vector.broadcast %107 : vector<8x1xf32> to vector<8x32xf32>
    %109 = arith.mulf %104, %108 : vector<8x32xf32>
    %110 = vector.broadcast %90 : vector<1x32xf32> to vector<8x32xf32>
    %111 = arith.mulf %109, %110 : vector<8x32xf32>
    %112 = vector.broadcast %91 : vector<1x32xf32> to vector<8x32xf32>
    %113 = arith.addf %111, %112 : vector<8x32xf32>
    %114 = arith.truncf %113 : vector<8x32xf32> to vector<8x32xbf16>
    %c0_62 = arith.constant 0 : index
    %c0_63 = arith.constant 0 : index
    %115 = vector.load %arg21[%c0_62, %c0_63] : memref<8x32xbf16, #tpu.memory_space<vmem>>, vector<8x32xbf16>
    tpu.vector_store %arg21[%c0_62, %c0_63], %114 {strides = array<i32>} : memref<8x32xbf16, #tpu.memory_space<vmem>>, vector<8x32xbf16>,
    return
  }
  func.func @transform_0(%arg0: i32, %arg1: i32) -> (i32, i32, i32) {
    %c0_i32 = arith.constant 0 : i32
    %c0_i32_0 = arith.constant 0 : i32
    %c0_i32_1 = arith.constant 0 : i32
    return %arg0, %c0_i32, %c0_i32_0 : i32, i32, i32
  }
  func.func @transform_1(%arg0: i32, %arg1: i32) -> (i32, i32) {
    %c1_i32 = arith.constant 1 : i32
    %0 = arith.muli %arg0, %c1_i32 : i32
    %1 = arith.addi %0, %arg1 : i32
    %c0_i32 = arith.constant 0 : i32
    %c0_i32_0 = arith.constant 0 : i32
    return %1, %c0_i32 : i32, i32
  }
  func.func @transform_2(%arg0: i32, %arg1: i32) -> (i32, i32) {
    %c0_i32 = arith.constant 0 : i32
    %c0_i32_0 = arith.constant 0 : i32
    return %arg0, %c0_i32 : i32, i32
  }
  func.func @transform_3(%arg0: i32, %arg1: i32) -> (i32, i32, i32) {
    %c0_i32 = arith.constant 0 : i32
    %c0_i32_0 = arith.constant 0 : i32
    %c0_i32_1 = arith.constant 0 : i32
    %c0_i32_2 = arith.constant 0 : i32
    return %c0_i32, %c0_i32_0, %c0_i32_1 : i32, i32, i32
  }
  func.func @transform_4(%arg0: i32, %arg1: i32) -> (i32, i32, i32) {
    %c0_i32 = arith.constant 0 : i32
    %c0_i32_0 = arith.constant 0 : i32
    %c0_i32_1 = arith.constant 0 : i32
    %c0_i32_2 = arith.constant 0 : i32
    return %c0_i32, %c0_i32_0, %c0_i32_1 : i32, i32, i32
  }
  func.func @transform_5(%arg0: i32, %arg1: i32) -> (i32, i32, i32) {
    %c0_i32 = arith.constant 0 : i32
    %c0_i32_0 = arith.constant 0 : i32
    %c0_i32_1 = arith.constant 0 : i32
    %c0_i32_2 = arith.constant 0 : i32
    return %c0_i32, %c0_i32_0, %c0_i32_1 : i32, i32, i32
  }
  func.func @transform_6(%arg0: i32, %arg1: i32) -> (i32, i32, i32) {
    %c0_i32 = arith.constant 0 : i32
    %c0_i32_0 = arith.constant 0 : i32
    %c0_i32_1 = arith.constant 0 : i32
    %c0_i32_2 = arith.constant 0 : i32
    return %c0_i32, %c0_i32_0, %c0_i32_1 : i32, i32, i32
  }
  func.func @transform_7(%arg0: i32, %arg1: i32) -> (i32, i32, i32) {
    %c0_i32 = arith.constant 0 : i32
    %c0_i32_0 = arith.constant 0 : i32
    %c0_i32_1 = arith.constant 0 : i32
    %c0_i32_2 = arith.constant 0 : i32
    return %c0_i32, %c0_i32_0, %c0_i32_1 : i32, i32, i32
  }
  func.func @transform_8(%arg0: i32, %arg1: i32) -> (i32, i32, i32) {
    %c0_i32 = arith.constant 0 : i32
    %c0_i32_0 = arith.constant 0 : i32
    %c0_i32_1 = arith.constant 0 : i32
    %c0_i32_2 = arith.constant 0 : i32
    return %c0_i32, %c0_i32_0, %c0_i32_1 : i32, i32, i32
  }
  func.func @transform_9(%arg0: i32, %arg1: i32) -> (i32, i32, i32) {
    %c0_i32 = arith.constant 0 : i32
    %c0_i32_0 = arith.constant 0 : i32
    %c0_i32_1 = arith.constant 0 : i32
    %c0_i32_2 = arith.constant 0 : i32
    return %c0_i32, %c0_i32_0, %c0_i32_1 : i32, i32, i32
  }
  func.func @transform_10(%arg0: i32, %arg1: i32) -> (i32, i32) {
    %c0_i32 = arith.constant 0 : i32
    %c0_i32_0 = arith.constant 0 : i32
    %c0_i32_1 = arith.constant 0 : i32
    return %c0_i32, %c0_i32_0 : i32, i32
  }
  func.func @transform_11(%arg0: i32, %arg1: i32) -> (i32, i32) {
    %c0_i32 = arith.constant 0 : i32
    %c0_i32_0 = arith.constant 0 : i32
    %c0_i32_1 = arith.constant 0 : i32
    return %c0_i32, %c0_i32_0 : i32, i32
  }
  func.func @transform_12(%arg0: i32, %arg1: i32) -> (i32, i32) {
    %c0_i32 = arith.constant 0 : i32
    %c0_i32_0 = arith.constant 0 : i32
    %c0_i32_1 = arith.constant 0 : i32
    return %c0_i32, %c0_i32_0 : i32, i32
  }
  func.func @transform_13(%arg0: i32, %arg1: i32) -> (i32, i32) {
    %c0_i32 = arith.constant 0 : i32
    %c0_i32_0 = arith.constant 0 : i32
    %c0_i32_1 = arith.constant 0 : i32
    return %c0_i32, %c0_i32_0 : i32, i32
  }
  func.func @transform_14(%arg0: i32, %arg1: i32) -> (i32, i32) {
    %c0_i32 = arith.constant 0 : i32
    %c0_i32_0 = arith.constant 0 : i32
    %c0_i32_1 = arith.constant 0 : i32
    return %c0_i32, %c0_i32_0 : i32, i32
  }
  func.func @transform_15(%arg0: i32, %arg1: i32) -> (i32, i32) {
    %c0_i32 = arith.constant 0 : i32
    %c0_i32_0 = arith.constant 0 : i32
    %c0_i32_1 = arith.constant 0 : i32
    return %c0_i32, %c0_i32_0 : i32, i32
  }
  func.func @transform_16(%arg0: i32, %arg1: i32) -> (i32, i32) {
    %c0_i32 = arith.constant 0 : i32
    %c0_i32_0 = arith.constant 0 : i32
    %c0_i32_1 = arith.constant 0 : i32
    return %c0_i32, %c0_i32_0 : i32, i32
  }
  func.func @transform_17(%arg0: i32, %arg1: i32) -> (i32, i32) {
    %c0_i32 = arith.constant 0 : i32
    %c0_i32_0 = arith.constant 0 : i32
    %c0_i32_1 = arith.constant 0 : i32
    return %c0_i32, %c0_i32_0 : i32, i32
  }
  func.func @transform_18(%arg0: i32, %arg1: i32) -> (i32, i32) {
    %c0_i32 = arith.constant 0 : i32
    %c0_i32_0 = arith.constant 0 : i32
    %c0_i32_1 = arith.constant 0 : i32
    return %c0_i32, %c0_i32_0 : i32, i32
  }
  func.func @transform_19(%arg0: i32, %arg1: i32) -> (i32, i32) {
    %c1_i32 = arith.constant 1 : i32
    %0 = arith.muli %arg0, %c1_i32 : i32
    %1 = arith.addi %0, %arg1 : i32
    %c0_i32 = arith.constant 0 : i32
    %c0_i32_0 = arith.constant 0 : i32
    return %1, %c0_i32 : i32, i32
  }
}

module attributes {stable_mosaic.version = 11 : i64} {
  func.func @_pooler_kernel(%arg0: i32, %arg1: memref<2x32xbf16, #tpu.memory_space<vmem>>, %arg2: memref<32x32xbf16, #tpu.memory_space<vmem>>, %arg3: memref<1x32xf32, #tpu.memory_space<vmem>>, %arg4: memref<2x32xf32, #tpu.memory_space<vmem>>) attributes {dimension_semantics = [#tpu.dimension_semantics<arbitrary>], iteration_bounds = array<i64: 1>, scalar_prefetch = 0 : i64, scratch_operands = 0 : i64, tpu.core_type = #tpu.core_type<tc>, window_params = [{pipeline_mode = #tpu.pipeline_mode<synchronous>, transform_indices = @transform_0, window_bounds = array<i64: 2, 32>}, {pipeline_mode = #tpu.pipeline_mode<synchronous>, transform_indices = @transform_1, window_bounds = array<i64: 32, 32>}, {pipeline_mode = #tpu.pipeline_mode<synchronous>, transform_indices = @transform_2, window_bounds = array<i64: 1, 32>}, {pipeline_mode = #tpu.pipeline_mode<synchronous>, transform_indices = @transform_3, window_bounds = array<i64: 2, 32>}]} {
    %c0 = arith.constant 0 : index
    %c0_0 = arith.constant 0 : index
    %0 = vector.load %arg1[%c0, %c0_0] : memref<2x32xbf16, #tpu.memory_space<vmem>>, vector<2x32xbf16>
    %c0_1 = arith.constant 0 : index
    %c0_2 = arith.constant 0 : index
    %1 = vector.load %arg2[%c0_1, %c0_2] : memref<32x32xbf16, #tpu.memory_space<vmem>>, vector<32x32xbf16>
    %cst = arith.constant dense<0.000000e+00> : vector<2x32xf32>
    %2 = tpu.matmul %0, %1, %cst {dimension_numbers = #tpu.dot_dimension_numbers<[1], [0], [0], [1], [0, 0, 1, 1], [], []>} : vector<2x32xbf16>, vector<32x32xbf16>, vector<2x32xf32> -> vector<2x32xf32>
    %c0_3 = arith.constant 0 : index
    %c0_4 = arith.constant 0 : index
    %3 = vector.load %arg3[%c0_3, %c0_4] : memref<1x32xf32, #tpu.memory_space<vmem>>, vector<1x32xf32>
    %4 = vector.broadcast %3 : vector<1x32xf32> to vector<2x32xf32>
    %5 = arith.addf %2, %4 : vector<2x32xf32>
    %6 = math.tanh %5 : vector<2x32xf32>
    %c0_5 = arith.constant 0 : index
    %c0_6 = arith.constant 0 : index
    %7 = vector.load %arg4[%c0_5, %c0_6] : memref<2x32xf32, #tpu.memory_space<vmem>>, vector<2x32xf32>
    tpu.vector_store %arg4[%c0_5, %c0_6], %6 {strides = array<i32>} : memref<2x32xf32, #tpu.memory_space<vmem>>, vector<2x32xf32>,
    return
  }
  func.func @transform_0(%arg0: i32) -> (i32, i32) {
    %c0_i32 = arith.constant 0 : i32
    %c0_i32_0 = arith.constant 0 : i32
    %c0_i32_1 = arith.constant 0 : i32
    return %c0_i32, %c0_i32_0 : i32, i32
  }
  func.func @transform_1(%arg0: i32) -> (i32, i32) {
    %c0_i32 = arith.constant 0 : i32
    %c0_i32_0 = arith.constant 0 : i32
    %c0_i32_1 = arith.constant 0 : i32
    return %c0_i32, %c0_i32_0 : i32, i32
  }
  func.func @transform_2(%arg0: i32) -> (i32, i32) {
    %c0_i32 = arith.constant 0 : i32
    %c0_i32_0 = arith.constant 0 : i32
    %c0_i32_1 = arith.constant 0 : i32
    return %c0_i32, %c0_i32_0 : i32, i32
  }
  func.func @transform_3(%arg0: i32) -> (i32, i32) {
    %c0_i32 = arith.constant 0 : i32
    %c0_i32_0 = arith.constant 0 : i32
    %c0_i32_1 = arith.constant 0 : i32
    return %c0_i32, %c0_i32_0 : i32, i32
  }
}

</mosaic_0001>

<bundles_post_ra>
// kernel: tpu_custom_call.1
= control target key start
LH: loop header
LB: loop body
LE: loop exit
PB: predicated region body
PF: predicated region fallthrough
CT: control target
= control target key end

     0   :  { %7 = vsyncpa [#allocation3], 0  ;;  %s757_s0 = inlined_call_operand.hbm [shape: f32[8,128], index: 0, kind: input, shape index: {}]   ;;  %s758_s1 = inlined_call_operand.hbm [shape: f32[16,128], index: 1, kind: input, shape index: {}]   ;;  %s759_s2 = inlined_call_operand.hbm [shape: f32[16,128], index: 2, kind: output, shape index: {}]  }
   0x1   :  { %8 = vsyncpa [#allocation6], 0 }
   0x2   :  { %10 = vsyncpa [#allocation6 + $0x1], 0 }
   0x3   :  { %11 = vsyncpa [#allocation4], 0 }
   0x4   :  { %13 = vsyncpa [#allocation4 + $0x1], 0  ;;  %s541_s9 = smov 0   ;;  %s543_s10 = smov 0  }
   0x5   :  { %s545_s11 = smov 0   ;;  %s547_s12 = smov 0  }
   0x6   :  { %s549_s13 = smov 0   ;;  %s551_s14 = smov 0  }
   0x7 LB: > { %s289_s15 = sadd.s32 4294967295, %s521_s14   ;;  %s290_s16 = sadd.s32 4294967294, %s521_s14   ;;  %s521_s14 = sphi %s551_s14, %s19_s14   ;;  %s517_s13 = sphi %s549_s13, %s784_s13   ;;  %s513_s12 = sphi %s547_s12, %s783_s12   ;;  %s509_s11 = sphi %s545_s11, %s782_s11   ;;  %s505_s10 = sphi %s543_s10, %s781_s10   ;;  %s501_s9 = sphi %s541_s9, %s780_s9  }
   0x8   : > { %p72_p0 = scmp.ne.s32.totalorder %s505_s10, %s501_s9  ;;  %p575_p1 = scmp.eq.s32.totalorder %s289_s15, 0 }
   0x9   : > { %p579_p2 = scmp.eq.s32.totalorder %s289_s15, 1  ;;  %p102_p3 = scmp.eq.s32.totalorder %s290_s16, 1 }
   0xa   : > { %s764_s17 = scalar_select %p575_p1, 1, 0 }
   0xb   : > { %s765_s18 = scalar_select %p579_p2, 1, 0 }
   0xc   : > { %p585_p4 = por %p575_p1, %p72_p0  ;;  %p291_p5 = scmp.ge.s32.totalorder %s521_s14, 1 }
   0xd   : > { %p590_p6 = por %p102_p3, %p72_p0  ;;  %p109_p7 = scmp.lt.s32.totalorder %s521_s14, 3 }
   0xe   : > { %s766_s19 = scalar_select %p585_p4, 1, 0 }
   0xf   : > { %s767_s20 = scalar_select %p590_p6, 1, 0 }
  0x10   : > { %p595_p8 = pnand %p291_p5, %p109_p7  ;;  %s523_s22 = smov [#allocation2]  }
  0x11   : > { %s122_s23 = sshll.u32 %s523_s22, 4  ;;  %s31_s25 = sadd.s32 1, %s517_s13  ;;  %s123_s23 = int_to_ptr.vmem [resolvable:$true] %s122_s23 }
  0x12   : > { %s768_s21 = scalar_select %p595_p8, 1, 0 }
  0x13   : > { %p312_p10 = pneg %p595_p8  ;;  %s59_s26 = sadd.s32 1, %s509_s11 }
  0x14   : > { %p610_p12 = scmp.ge.s32.totalorder %s31_s25, 2  ;;  %s377_s30 = scalar_lea.hbm %s757_s0, 128 }
  0x15   : > { %p604_p11 = pnand %p312_p10, %p575_p1  ;;  %p378_p13 = scmp.ne.s32.totalorder %s757_s0, %s377_s30 }
  0x16   : > { %s770_s27 = scalar_select %p610_p12, 1, 0 }
  0x17   : > { %p379_p0 = pneg %p604_p11  ;;  %p384_p7 = scmp.lt.u32.totalorder %s377_s30, %s757_s0 }
  0x19   : > { %p380_p3 = pnand %p379_p0, %p378_p13 }
  0x1b   : > { %p381_p5 = pneg %p380_p3 }
  0x1d   : > { %p386_p10 = pnand %p384_p7, %p381_p5 }
  0x1f   : > { %389 = shalt.err (!%p386_p10)
}
  0x20   : > { %s390_s7 = scalar_lea.vmem %s123_s23, 128  ;;  %p398_p1 = scmp.lt.s32.totalorder %s123_s23, %s123_s23 }
  0x21   : > { %p391_p9 = scmp.ne.s32.totalorder %s123_s23, %s390_s7  ;;  %p399_p8 = scmp.lt.s32.totalorder %s390_s7, %s390_s7 }
  0x23   : > { %p393_p6 = pnand %p391_p9, %p379_p0  ;;  %p400_p2 = por %p399_p8, %p398_p1 }
  0x25   : > { %p394_p4 = pneg %p393_p6 }
  0x27   : > { %p401_p12 = pnand %p400_p2, %p394_p4 }
  0x29   : > { %404 = shalt.err (!%p401_p12)
}
  0x2a   : > { %315 = dma.hbm_to_vmem [thread:$0]  (!%p604_p11), %s757_s0, 128, %s123_s23, [#allocation3]  }
  0x2b   : > { %p771_p1 = scmp.ne.s32.totalorder %s770_s27, 0  ;;  %p66_p2 = scmp.ne.s32.totalorder %s509_s11, %s505_s10 }
  0x2c   : > { %p67_p4 = scmp.eq.s32.totalorder %s521_s14, 0  ;;  %p325_p6 = scmp.lt.s32.totalorder %s521_s14, 2 }
  0x2d   : > { %s786_s25 = smov (%p771_p1, %s31_s25), 0  ;;  %p772_p12 = scmp.ne.s32.totalorder %s765_s18, 0 }
  0x2e   : > { %s56_s16 = ssub.s32 %s517_s13, %s786_s25  ;;  %p68_p9 = por %p67_p4, %p66_p2 }
  0x2f   : > { %p57_p8 = scmp.eq.s32.totalorder %s56_s16, 0  ;;  %p642_p13 = por %p772_p12, %p66_p2 }
  0x30   : > { %s133_s24 = sand.u32 1, %s509_s11   ;;  %s295_s27 = sshll.u32 %s517_s13, 7 }
  0x31   : > { %s650_s28 = scalar_select %p57_p8, %s509_s11, %s59_s26  }
  0x32   : > { %s294_s23 = sshll.u32 %s133_s24, 3  ;;  %s656_s3 = scalar_lea.hbm %s758_s1, %s295_s27 }
  0x33   : > { %s137_s18 = scalar_lea.vmem [#allocation5], %s294_s23  ;;  %p660_p11 = pnand %p325_p6, %p68_p9 }
  0x34   : > { %s144_s4 = sshll.u32 %s137_s18, 4  ;;  %s134_s26 = scalar_lea.sflag [#allocation6], %s133_s24  ;;  %s658_s4 = int_to_ptr.vmem [resolvable:$true] %s144_s4 }
  0x35   : > { %s405_s6 = scalar_lea.hbm %s656_s3, 128  ;;  %p407_p3 = pneg %p660_p11 }
  0x36   : > { %p406_p0 = scmp.ne.s32.totalorder %s656_s3, %s405_s6  ;;  %s410_s15 = scalar_lea.hbm %s758_s1, 256 }
  0x37   : > { %p411_p10 = scmp.lt.u32.totalorder %s656_s3, %s758_s1  ;;  %p412_p1 = scmp.lt.u32.totalorder %s410_s15, %s405_s6 }
  0x38   : > { %p408_p5 = pnand %p407_p3, %p406_p0  ;;  %p414_p4 = scmp.lt.u32.totalorder %s405_s6, %s656_s3 }
  0x39   : > { %p413_p2 = por %p412_p1, %p411_p10 }
  0x3a   : > { %p409_p7 = pneg %p408_p5 }
  0x3b   : > { %p415_p6 = por %p414_p4, %p413_p2 }
  0x3d   : > { %p416_p8 = pnand %p415_p6, %p409_p7 }
  0x3f   : > { %419 = shalt.err (!%p416_p8)
}
  0x40   : > { %s420_s24 = scalar_lea.vmem %s658_s4, 128  ;;  %s524_s27 = smov [#allocation5]  }
  0x41   : > { %p421_p9 = scmp.ne.s32.totalorder %s658_s4, %s420_s24  ;;  %s425_s29 = sshll.u32 %s524_s27, 4  ;;  %s426_s29 = int_to_ptr.vmem [resolvable:$false] %s425_s29 }
  0x42   : > { %s427_s30 = scalar_lea.vmem %s426_s29, 256  ;;  %p428_p5 = scmp.lt.s32.totalorder %s658_s4, %s426_s29 }
  0x43   : > { %p423_p12 = pnand %p421_p9, %p407_p3  ;;  %p429_p10 = scmp.lt.s32.totalorder %s427_s30, %s420_s24 }
  0x45   : > { %p424_p0 = pneg %p423_p12  ;;  %p430_p1 = por %p429_p10, %p428_p5 }
  0x47   : > { %p431_p2 = pnand %p430_p1, %p424_p0 }
  0x49   : > { %434 = shalt.err (!%p431_p2)
}
  0x4a   : > { %319 = dma.hbm_to_vmem [thread:$0]  (!%p660_p11), %s656_s3, 128, %s658_s4, %s134_s26  }
  0x4b   : > { %p775_p7 = scmp.ne.s32.totalorder %s768_s21, 0 }
  0x4c   : > { %p776_p3 = scmp.ne.s32.totalorder (!%p775_p7), %s764_s17, 0 }
  0x4d   : > { %153 = sbr.rel (%p775_p7) target bundleno = 114 (0x72), region = 28 }
  0x54   : > { %488 = dma.done.wait (%p776_p3), [#allocation3], 128  }
  0x55   : > { %490 = vsyncadd (%p776_p3), [#allocation3], 4294967168  ;;  %s696_s18 = sand.u32 1, %s505_s10   ;;  %p777_p4 = scmp.ne.s32.totalorder %s766_s19, 0 }
  0x56   : > { %s298_s6 = sshll.u32 %s696_s18, 3  ;;  %s160_s5 = scalar_lea.sflag [#allocation6], %s696_s18 }
  0x57   : > { %s163_s7 = scalar_lea.vmem [#allocation5], %s298_s6 }
  0x58   : > { %492 = dma.done.wait (%p777_p4), %s160_s5, 128  }
  0x59   : > { %494 = vsyncadd (%p777_p4), %s160_s5, 4294967168  ;;  %s183_s21 = scalar_lea.vmem [#allocation7], %s298_s6  ;;  %s301_s3 = sshll.u32 %s513_s12, 7  ;;  %v184_v0 = vld [vmem:[%s163_s7] sm:$0xff]  ;;  %v185_v1 = vld [vmem:[#allocation2] sm:$0xff] }
  0x5a   : > { %s202_s17 = sshll.u32 %s183_s21, 4  ;;  %v186_v2 = vadd.f32 %v185_v1, %v184_v0  ;;  %s710_s8 = scalar_lea.hbm %s759_s2, %s301_s3  ;;  %s705_s17 = int_to_ptr.vmem [resolvable:$true] %s202_s17 }
  0x5b   : > { %s189_s19 = scalar_lea.sflag [#allocation4], %s696_s18  ;;  %s435_s15 = scalar_lea.vmem %s705_s17, 128 }
  0x5c   : > { %187 = vst [vmem:[%s183_s21] sm:$0xff] %v186_v2  ;;  %p436_p11 = scmp.ne.s32.totalorder %s705_s17, %s435_s15  ;;  %s525_s12 = smov [#allocation7]  }
  0x5d   : > { %s439_s16 = sshll.u32 %s525_s12, 4  ;;  %s440_s16 = int_to_ptr.vmem [resolvable:$false] %s439_s16 }
  0x5e   : > { %p437_p6 = pnand %p436_p11, %p642_p13  ;;  %s441_s23 = scalar_lea.vmem %s440_s16, 256 }
  0x5f   : > { %p442_p9 = scmp.lt.s32.totalorder %s705_s17, %s440_s16  ;;  %p443_p12 = scmp.lt.s32.totalorder %s441_s23, %s435_s15 }
  0x60   : > { %p438_p8 = pneg %p437_p6 }
  0x61   : > { %p444_p0 = por %p443_p12, %p442_p9 }
  0x63   : > { %p445_p5 = pnand %p444_p0, %p438_p8 }
  0x65   : > { %448 = shalt.err (!%p445_p5)
}
  0x66   : > { %s449_s24 = scalar_lea.hbm %s710_s8, 128  ;;  %s453_s30 = scalar_lea.hbm %s759_s2, 256 }
  0x67   : > { %p450_p10 = scmp.ne.s32.totalorder %s710_s8, %s449_s24  ;;  %p454_p7 = scmp.lt.u32.totalorder %s710_s8, %s759_s2 }
  0x68   : > { %p455_p3 = scmp.lt.u32.totalorder %s453_s30, %s449_s24  ;;  %p457_p11 = scmp.lt.u32.totalorder %s449_s24, %s710_s8 }
  0x69   : > { %p451_p1 = pnand %p450_p10, %p642_p13 }
  0x6a   : > { %p456_p4 = por %p455_p3, %p454_p7 }
  0x6b   : > { %p452_p2 = pneg %p451_p1 }
  0x6c   : > { %p458_p6 = por %p457_p11, %p456_p4 }
  0x6e   : > { %p459_p8 = pnand %p458_p6, %p452_p2 }
  0x70   : > { %462 = shalt.err (!%p459_p8)
}
  0x71   : > { %310 = dma.vmem_to_hbm [thread:$0]  (%p642_p13), %s705_s17, 128, %s710_s8, %s189_s19  }
  0x72 PF: > { %s214_s5 = sand.u32 1, %s501_s9   ;;  %p778_p9 = scmp.ne.s32.totalorder %s767_s20, 0 }
  0x73   : > { %p779_p12 = scmp.ge.s32.totalorder %s521_s14, 2  ;;  %s215_s7 = scalar_lea.sflag [#allocation4], %s214_s5 }
  0x75   : > { %p321_p0 = pnand %p779_p12, %p778_p9 }
  0x77   : > { %496 = dma.done.wait (!%p321_p0), %s215_s7, 128  }
  0x78   : > { %498 = vsyncadd (!%p321_p0), %s215_s7, 4294967168  ;;  %s19_s14 = sadd.s32 1, %s521_s14   ;;  %s780_s9 = smov %s505_s10 }
  0x79   : > { %p16_p5 = scmp.ge.s32.totalorder %s19_s14, 4   ;;  %s781_s10 = smov %s509_s11 }
  0x7a   : > { %s782_s11 = smov %s650_s28  ;;  %s783_s12 = smov %s517_s13 }
  0x7b   : > { %s784_s13 = smov %s786_s25  ;;  %18 = sbr.rel (!%p16_p5) target bundleno = 7 (0x7), region = 78 }
  0x82   :  { %220 = vsyncpa [#allocation3], 1 }
  0x83   :  { %222 = vsyncpa [#allocation3 + $0x1], 1 }
  0x84   :  { %223 = vsyncpa [#allocation6], 1 }
  0x85   :  { %225 = vsyncpa [#allocation6 + $0x1], 1 }
  0x86   :  { %226 = vsyncpa [#allocation4], 1 }
  0x87   :  { %228 = vsyncpa [#allocation4 + $0x1], 1 }

// kernel: text_encoder_forward.4
= control target key start
LH: loop header
LB: loop body
LE: loop exit
PB: predicated region body
PF: predicated region fallthrough
CT: control target
= control target key end

     0   :  { %vm18_vm0 = vcmask 261120   ;;  %vm70_vm1 = vcmask 257024   ;;  %s129_s0 = inlined_call_operand.vmem [shape: f32[16,32], index: 0, kind: input, shape index: {}]   ;;  %s130_s1 = inlined_call_operand.vmem [shape: f32[1,32], index: 1, kind: input, shape index: {}]   ;;  %s131_s2 = inlined_call_operand.vmem [shape: f32[1,32], index: 2, kind: input, shape index: {}]   ;;  %s132_s3 = inlined_call_operand.vmem [shape: bf16[16,32], index: 3, kind: output, shape index: {}]  }
   0x1   :  { %v14_v0 = vld [vmem:[%s129_s0] sm:$0xff]  ;;  %v15_v1 = vld [vmem:[%s129_s0 + $0x8] sm:$0xff] }
   0x2   :  { %v19_v2 = vsel %vm18_vm0, %v14_v0, 0.0  ;;  %v22_v3 = vsel %vm18_vm0, %v15_v1, 0.0  ;;  %v77_v21 = vld [vmem:[%s130_s1] ss:$0 sm:$0xff] }
   0x3   :  { %20 = vadd.xlane.f32.xlu0 %v19_v2  ;;  %v78_v23 = vld [vmem:[%s131_s2] ss:$0 sm:$0xff] }
   0x7   :  { %23 = vadd.xlane.f32.xlu0 %v22_v3 }
  0x90   :  { %v21_v4 = vpop.xlane.xlu0 %20 }
  0x91   :  { %v26_v5 = vmul.f32 0.03125, %v21_v4 }
  0x93   :  { %v28_v6 = vsub.f32 %v14_v0, %v26_v5 }
  0x94   :  { %v24_v7 = vpop.xlane.xlu0 %23 }
  0x95   :  { %v27_v8 = vmul.f32 0.03125, %v24_v7  ;;  %v30_v9 = vmul.f32 %v28_v6, %v28_v6 }
  0x97   :  { %v29_v10 = vsub.f32 %v15_v1, %v27_v8  ;;  %v32_v11 = vsel %vm18_vm0, %v30_v9, 0.0 }
  0x98   :  { %33 = vadd.xlane.f32.xlu1 %v32_v11 }
  0x99   :  { %v31_v12 = vmul.f32 %v29_v10, %v29_v10 }
  0x9b   :  { %v35_v13 = vsel %vm18_vm0, %v31_v12, 0.0 }
  0x9c   :  { %36 = vadd.xlane.f32.xlu1 %v35_v13 }
 0x125   :  { %v34_v14 = vpop.xlane.xlu1 %33 }
 0x126   :  { %v38_v15 = vmul.f32 0.03125, %v34_v14 }
 0x128   :  { %v40_v16 = vadd.f32 1e-12, %v38_v15 }
 0x129   :  { %v37_v17 = vpop.xlane.xlu1 %36 }
 0x12a   :  { %83 = vrsqrt.f32 %v40_v16  ;;  %v39_v18 = vmul.f32 0.03125, %v37_v17 }
 0x12c   :  { %v41_v19 = vadd.f32 1e-12, %v39_v18 }
 0x12e   :  { %85 = vrsqrt.f32 %v41_v19 }
 0x134   :  { %v84_v20 = vpop.eup %83 }
 0x135   :  { %v44_v22 = vmul.f32 %v84_v20, %v28_v6 }
 0x137   :  { %v52_v24 = vmul.f32 %v77_v21, %v44_v22 }
 0x138   :  { %v86_v25 = vpop.eup %85 }
 0x139   :  { %v60_v26 = vadd.f32 %v78_v23, %v52_v24  ;;  %v45_v27 = vmul.f32 %v86_v25, %v29_v10 }
 0x13b   :  { %v81_v28 = vpack.c.bf16 %v60_v26, %v60_v26  ;;  %v53_v29 = vmul.f32 %v77_v21, %v45_v27 }
 0x13d   :  { %71 = vst.msk [vmem:[%s132_s3] sm:$0xf] %vm70_vm1, %v81_v28  ;;  %v61_v30 = vadd.f32 %v78_v23, %v53_v29 }
 0x13f   :  { %v82_v31 = vpack.c.bf16 %v61_v30, %v61_v30 }
 0x141   :  { %72 = vst.msk [vmem:[%s132_s3 + $0x4] sm:$0xf] %vm70_vm1, %v82_v31 }

// kernel: text_encoder_forward.7
= control target key start
LH: loop header
LB: loop body
LE: loop exit
PB: predicated region body
PF: predicated region fallthrough
CT: control target
= control target key end

     0   :  { %v147_v1 = vmov 0.0   ;;  %vm148_vm0 = vmmov 0   ;;  %s194_s0 = inlined_call_operand.vmem [shape: bf16[2,32], index: 0, kind: input, shape index: {}]   ;;  %s195_s1 = inlined_call_operand.vmem [shape: bf16[32,32], index: 1, kind: input, shape index: {}]   ;;  %s196_s2 = inlined_call_operand.vmem [shape: f32[1,32], index: 2, kind: input, shape index: {}]   ;;  %s197_s3 = inlined_call_operand.hbm [shape: f32[2,32], index: 3, kind: output, shape index: {}]  }
   0x1   :  { %v119_v0 = vld [vmem:[%s195_s1] sm:$0xff]   ;;  %108 = vmatprep.subr.bf16.mxu0 %v147_v1  ;;  %v120_v2 = vld [vmem:[%s195_s1 + $0x8] sm:$0xff]   ;;  %112 = vmatprep.mubr.msk.bf16.mxu0 %vm148_vm0, %v147_v1 }
   0x2   :  { %109 = vmatpush3.bf16.msra.mxu0 %v119_v0 }
   0x3   :  { %110 = vmatprep.subr.bf16.mxu0 %v147_v1 }
   0x4   :  { %8 = vsyncpa [#allocation3], 0  ;;  %v16_v3 = vld [vmem:[%s194_s0] sm:$0x1]  ;;  %vm40_vm1 = vcmask 261120   ;;  %s149_s1 = smov [#allocation2]  }
   0x5   :  { %v101_v4 = vld [vmem:[%s196_s2] ss:$0 sm:$0xff]  ;;  %s93_s20 = sshll.u32 %s149_s1, 4  ;;  %vm85_vm2 = vcmask 254976   ;;  %s94_s20 = int_to_ptr.vmem [resolvable:$true] %s93_s20 }
   0x6   :  { %111 = vmatpush3.bf16.msra.mxu0 %v120_v2  ;;  %s123_s21 = scalar_lea.vmem %s94_s20, 32  ;;  %p128_p1 = scmp.lt.s32.totalorder %s94_s20, %s94_s20 }
   0x7   :  { %p124_p0 = scmp.ne.s32.totalorder %s94_s20, %s123_s21  ;;  %p129_p2 = scmp.lt.s32.totalorder %s123_s21, %s123_s21 }
   0x9   :  { %113 = vmatmul.mubr.msk.bf16.vlgmr.msra.gmra.mrb[0].mxu0 %vm40_vm1, %v16_v3  ;;  %p130_p3 = por %p129_p2, %p128_p1 }
   0xb   :  { %p131_p4 = pnand %p130_p3, %p124_p0 }
  0xdc   :  { %v78_v5 = vpop.f32.mrb[0].mxu0 }
  0xdd   :  { %v79_v6 = vadd.f32 %v101_v4, %v78_v5  ;;  %v114_v7 = vpop.f32.mrb[1].mxu0 }
  0xde   :  { %v81_v8 = vpop.f32.mrb[2].mxu0 }
  0xdf   :  { %121 = vtanh.f32 %v79_v6  ;;  %v115_v9 = vpop.f32.mrb[3].mxu0 }
  0xe9   :  { %v122_v10 = vpop.eup %121 }
  0xea   :  { %86 = vst.msk [vmem:[#allocation2] sm:$0x3] %vm85_vm2, %v122_v10 }
  0xeb   :  { %134 = shalt.err (!%p131_p4)
}
  0xec   :  { %s135_s22 = scalar_lea.hbm %s197_s3, 32 }
  0xed   :  { %p136_p5 = scmp.ne.s32.totalorder %s197_s3, %s135_s22  ;;  %p139_p6 = scmp.lt.u32.totalorder %s135_s22, %s197_s3 }
  0xef   :  { %p141_p7 = pnand %p139_p6, %p136_p5 }
  0xf1   :  { %144 = shalt.err (!%p141_p7)
}
  0xf2   :  { %96 = dma.vmem_to_hbm [thread:$0]  %s94_s20, 32, %s197_s3, [#allocation3]  }
  0xf3   :  { %145 = dma.done.wait [#allocation3], 32  }
  0xf4   :  { %146 = vsyncadd [#allocation3], 4294967264 }
  0xf5   :  { %100 = vsyncpa [#allocation3], 1 }

// kernel: text_encoder_forward.5
= control target key start
LH: loop header
LB: loop body
LE: loop exit
PB: predicated region body
PF: predicated region fallthrough
CT: control target
= control target key end

     0   :  { %s2992_s30 = smov 0   ;;  %s2994_s20 = smov 0   ;;  %s3385_s0 = inlined_call_operand.vmem [shape: f32[2,1,8], index: 0, kind: input, shape index: {}]   ;;  %s3386_s1 = inlined_call_operand.vmem [shape: bf16[16,32], index: 1, kind: input, shape index: {}, may-alias: {1,2}]   ;;  %s3387_s2 = inlined_call_operand.vmem [shape: bf16[16,32], index: 2, kind: input, shape index: {}, may-alias: {1,2}]   ;;  %s3388_s3 = inlined_call_operand.vmem [shape: bf16[4,32,8], index: 3, kind: input, shape index: {}]   ;;  %s3389_s4 = inlined_call_operand.vmem [shape: bf16[4,32,8], index: 4, kind: input, shape index: {}]   ;;  %s3390_s5 = inlined_call_operand.vmem [shape: bf16[4,32,8], index: 5, kind: input, shape index: {}]   ;;  %s3391_s6 = inlined_call_operand.vmem [shape: f32[4,1,8], index: 6, kind: input, shape index: {}]   ;;  %s3392_s7 = inlined_call_operand.vmem [shape: f32[4,1,8], index: 7, kind: input, shape index: {}]   ;;  %s3393_s8 = inlined_call_operand.vmem [shape: f32[4,1,8], index: 8, kind: input, shape index: {}]   ;;  %s3394_s9 = inlined_call_operand.vmem [shape: bf16[4,8,32], index: 9, kind: input, shape index: {}]   ;;  %s3395_s10 = inlined_call_operand.vmem [shape: f32[1,32], index: 10, kind: input, shape index: {}]   ;;  %s3396_s11 = inlined_call_operand.vmem [shape: f32[1,32], index: 11, kind: input, shape index: {}]   ;;  %s3397_s12 = inlined_call_operand.vmem [shape: f32[1,32], index: 12, kind: input, shape index: {}]   ;;  %s3398_s13 = inlined_call_operand.vmem [shape: bf16[32,128], index: 13, kind: input, shape index: {}]   ;;  %s3399_s14 = inlined_call_operand.vmem [shape: f32[1,128], index: 14, kind: input, shape index: {}]   ;;  %s3400_s15 = inlined_call_operand.vmem [shape: bf16[128,32], index: 15, kind: input, shape index: {}]   ;;  %s3401_s16 = inlined_call_operand.vmem [shape: f32[1,32], index: 16, kind: input, shape index: {}]   ;;  %s3402_s17 = inlined_call_operand.vmem [shape: f32[1,32], index: 17, kind: input, shape index: {}]   ;;  %s3403_s18 = inlined_call_operand.vmem [shape: f32[1,32], index: 18, kind: input, shape index: {}]   ;;  %s3404_s19 = inlined_call_operand.vmem [shape: bf16[16,32], index: 19, kind: output, shape index: {}]  }
   0x1   :  { %3406 = sst [smem:[#allocation4_spill]] %s3385_s0  ;;  %s2990_s0 = smov 0  }
   0x2   :  { %3407 = sst [smem:[#allocation5_spill]] %s3386_s1 }
   0x3   :  { %3408 = sst [smem:[#allocation6_spill]] %s3387_s2 }
   0x4   :  { %3409 = sst [smem:[#allocation7_spill]] %s3388_s3 }
   0x5 LB: > { %s41_s21 = sadd.s32 1, %s2882_s30  ;;  %p2430_p0 = scmp.ge.s32.totalorder %s2886_s20, 1  ;;  %s2886_s20 = sphi %s2994_s20, %s29_s20   ;;  %s2882_s30 = sphi %s2992_s30, %s3415_s30   ;;  %s2878_s0 = sphi %s2990_s0, %s3414_s0  }
   0x6   : > { %p43_p1 = scmp.ge.s32.totalorder %s41_s21, 2  ;;  %p571_p2 = scmp.lt.s32.totalorder %s2886_s20, 3 }
   0x8   : > { %s3417_s21 = smov (%p43_p1, %s41_s21), 0  ;;  %p572_p3 = pnand %p2430_p0, %p571_p2 }
   0x9   : > { %v2808_v0 = vld [vmem:[%s3389_s4] sm:$0xff] (!%p572_p3)   ;;  %v2888_v1 = vmov (!%p572_p3), 0.0   ;;  %v2809_v2 = vld [vmem:[%s3389_s4 + $0x8] sm:$0xff] (!%p572_p3)   ;;  %v2810_v3 = vld [vmem:[%s3389_s4 + $0x30] sm:$0xff] (!%p572_p3)   ;;  %vm2889_vm0 = vmmov (!%p572_p3), 0   ;;  %p634_p4 = scmp.lt.s32.totalorder (!%p572_p3), %s2878_s0, 1 }
   0xa   : > { %575 = sbr.rel (%p572_p3) target bundleno = 2334 (0x91e), region = 96  ;;  %2586 = vmatprep.subr.bf16.mxu0 (!%p572_p3), %v2888_v1  ;;  %2610 = vmatprep.subr.bf16.mxu1 (!%p572_p3), %v2888_v1  ;;  %v2812_v4 = vld [vmem:[%s3389_s4 + $0x38] sm:$0xff] (!%p572_p3)   ;;  %vm718_vm1 = vcmask (!%p572_p3), 261120   ;;  %v2811_v5 = vld [vmem:[%s3389_s4 + $0x10] sm:$0xff] (!%p572_p3)   ;;  %s3410_s2 = sld [smem:[#allocation6_spill]] (!%p572_p3)  ;;  %v2815_v10 = vld [vmem:[%s3389_s4 + $0x20] sm:$0xff] (!%p572_p3)  }
   0xb   : > { %2587 = vmatpush3.bf16.msra.mxu0 (!%p572_p3), %v2808_v0  ;;  %2590 = vmatprep.mubr.msk.bf16.mxu0 (!%p572_p3), %vm2889_vm0, %v2888_v1  ;;  %v2814_v6 = vld [vmem:[%s3390_s5 + $0x10] sm:$0xff] (!%p572_p3)   ;;  %v2813_v8 = vld [vmem:[%s3389_s4 + $0x18] sm:$0xff] (!%p572_p3)   ;;  %v2817_v12 = vld [vmem:[%s3389_s4 + $0x28] sm:$0xff] (!%p572_p3)   ;;  %s3411_s24 = sld [smem:[#allocation7_spill]] (!%p572_p3)  ;;  %s3412_s22 = sld [smem:[#allocation5_spill]] (!%p572_p3)  ;;  %vm1174_vm2 = vcmask (!%p572_p3), 60416  }
   0xc   : > { %2588 = vmatprep.subr.bf16.mxu0 (!%p572_p3), %v2888_v1  ;;  %2614 = vmatprep.mubr.msk.bf16.mxu1 (!%p572_p3), %vm2889_vm0, %v2888_v1  ;;  %v2816_v9 = vld [vmem:[%s3390_s5 + $0x18] sm:$0xff] (!%p572_p3)   ;;  %v2818_v11 = vld [vmem:[%s3390_s5 + $0x30] sm:$0xff] (!%p572_p3)   ;;  %v2819_v14 = vld [vmem:[%s3390_s5] sm:$0xff] (!%p572_p3)   ;;  %vm1462_vm3 = vcmask (!%p572_p3), 64512   ;;  %vm1702_vm4 = vcmask (!%p572_p3), 1043456   ;;  %s3413_s28 = sld [smem:[#allocation4_spill]] (!%p572_p3) }
   0xd   : > { %2611 = vmatpush3.bf16.msra.mxu1 (!%p572_p3), %v2810_v3  ;;  %v2820_v13 = vld [vmem:[%s3390_s5 + $0x38] sm:$0xff] (!%p572_p3)   ;;  %v2821_v15 = vld [vmem:[%s3390_s5 + $0x8] sm:$0xff] (!%p572_p3)   ;;  %v2823_v18 = vld [vmem:[%s3390_s5 + $0x20] sm:$0xff] (!%p572_p3)   ;;  %vm2338_vm5 = vcmask (!%p572_p3), 257024  }
   0xe   : > { %2612 = vmatprep.subr.bf16.mxu1 (!%p572_p3), %v2888_v1  ;;  %v2825_v21 = vld [vmem:[%s3390_s5 + $0x28] sm:$0xff] (!%p572_p3)   ;;  %v2434_v27 = vld [vmem:[%s3392_s7] ss:$0 sm:$0xff] (!%p572_p3)  ;;  %v2437_v29 = vld [vmem:[%s3392_s7 + $0x3] ss:$0 sm:$0xff] (!%p572_p3) }
   0xf   : > { %2589 = vmatpush3.bf16.msra.mxu0 (!%p572_p3), %v2809_v2  ;;  %v2435_v41 = vld [vmem:[%s3392_s7 + $0x1] ss:$0 sm:$0xff] (!%p572_p3)  ;;  %v2436_v57 = vld [vmem:[%s3392_s7 + $0x2] ss:$0 sm:$0xff] (!%p572_p3)  ;;  %v2453_v59 = vld [vmem:[%s3393_s8 + $0x3] ss:$0 sm:$0xff] (!%p572_p3) }
  0x10   : > { %2594 = vmatprep.subr.bf16.mxu0 (!%p572_p3), %v2888_v1  ;;  %v2451_v43 = vld [vmem:[%s3393_s8 + $0x1] ss:$0 sm:$0xff] (!%p572_p3) }
  0x11   : > { %s3419_s0 = smov (!%p634_p4, %s2878_s0), 1  ;;  %2613 = vmatpush3.bf16.msra.mxu1 %v2812_v4  ;;  %v2822_v16 = vld [vmem:[%s3411_s24 + $0x10] sm:$0xff]   ;;  %v2824_v17 = vld [vmem:[%s3411_s24 + $0x18] sm:$0xff]   ;;  %v2827_v23 = vld [vmem:[%s3411_s24] sm:$0xff]  }
  0x12   : > { %s3031_s27 = sshll.u32 %s3419_s0, 2  ;;  %2626 = vmatprep.subr.bf16.mxu1 %v2888_v1  ;;  %v2826_v20 = vld [vmem:[%s3411_s24 + $0x30] sm:$0xff]   ;;  %v2828_v22 = vld [vmem:[%s3411_s24 + $0x38] sm:$0xff]   ;;  %v2829_v24 = vld [vmem:[%s3411_s24 + $0x8] sm:$0xff]   ;;  %s636_s29 = scalar_lea.vmem %s3413_s28, %s3419_s0 }
  0x13   : > { %s646_s23 = scalar_lea.vmem %s3410_s2, %s3031_s27  ;;  %s641_s2 = scalar_lea.vmem %s3412_s22, %s3031_s27  ;;  %v2830_v25 = vld [vmem:[%s3411_s24 + $0x20] sm:$0xff]   ;;  %v2831_v26 = vld [vmem:[%s3411_s24 + $0x28] sm:$0xff]  }
  0x14   : > { %v3044_v7 = vld [vmem:[%s646_s23] sm:$0xf]  ;;  %s651_s23 = scalar_lea.vmem %s3404_s19, %s3031_s27 }
  0x15   : > { %2591 = vmatmul.mubr.msk.bf16.vlgmr.msra.gmra.mrb[0].mxu0 %vm718_vm1, %v3044_v7  ;;  %2615 = vmatmul.mubr.msk.bf16.vlgmr.msra.gmra.mrb[0].mxu1 %vm718_vm1, %v3044_v7  ;;  %v3119_v19 = vld [vmem:[%s641_s2] sm:$0xf] }
  0x16   : > { %2595 = vmatpush3.bf16.msra.mxu0 %v2811_v5  ;;  %2598 = vmatprep.mubr.msk.bf16.mxu0 %vm2889_vm0, %v2888_v1 }
  0x17   : > { %2596 = vmatprep.subr.bf16.mxu0 %v2888_v1  ;;  %2627 = vmatpush3.bf16.msra.mxu1 %v2814_v6 }
  0x18   : > { %2630 = vmatprep.mubr.msk.bf16.mxu1 %vm2889_vm0, %v2888_v1  ;;  %2628 = vmatprep.subr.bf16.mxu1 %v2888_v1 }
  0x1a   : > { %2597 = vmatpush3.bf16.msra.mxu0 %v2813_v8 }
  0x1b   : > { %2602 = vmatprep.subr.bf16.mxu0 %v2888_v1  ;;  %2629 = vmatpush3.bf16.msra.mxu1 %v2816_v9 }
  0x1c   : > { %2642 = vmatprep.subr.bf16.mxu1 %v2888_v1 }
  0x1d   : > { %2599 = vmatmul.mubr.msk.bf16.vlgmr.msra.gmra.mrb[4].mxu0 %vm718_vm1, %v3044_v7 }
  0x1e   : > { %2603 = vmatpush3.bf16.msra.mxu0 %v2815_v10  ;;  %2606 = vmatprep.mubr.msk.bf16.mxu0 %vm2889_vm0, %v2888_v1  ;;  %v2450_v10 = vld [vmem:[%s3393_s8] ss:$0 sm:$0xff] }
  0x1f   : > { %2604 = vmatprep.subr.bf16.mxu0 %v2888_v1  ;;  %2631 = vmatmul.mubr.msk.bf16.vlgmr.msra.gmra.mrb[4].mxu1 %vm718_vm1, %v3044_v7 }
  0x20   : > { %2643 = vmatpush3.bf16.msra.mxu1 %v2818_v11  ;;  %2646 = vmatprep.mubr.msk.bf16.mxu1 %vm2889_vm0, %v2888_v1 }
  0x21   : > { %2644 = vmatprep.subr.bf16.mxu1 %v2888_v1 }
  0x22   : > { %2605 = vmatpush3.bf16.msra.mxu0 %v2817_v12  ;;  %v2467_v12 = vld [vmem:[%s3391_s6 + $0x1] ss:$0 sm:$0xff] }
  0x23   : > { %2618 = vmatprep.subr.bf16.mxu0 %v2888_v1 }
  0x24   : > { %2645 = vmatpush3.bf16.msra.mxu1 %v2820_v13 }
  0x25   : > { %2607 = vmatmul.mubr.msk.bf16.vlgmr.msra.gmra.mrb[8].mxu0 %vm718_vm1, %v3044_v7  ;;  %2658 = vmatprep.subr.bf16.mxu1 %v2888_v1 }
  0x26   : > { %2619 = vmatpush3.bf16.msra.mxu0 %v2819_v14  ;;  %2622 = vmatprep.mubr.msk.bf16.mxu0 %vm2889_vm0, %v2888_v1 }
  0x27   : > { %2620 = vmatprep.subr.bf16.mxu0 %v2888_v1  ;;  %2647 = vmatmul.mubr.msk.bf16.vlgmr.msra.gmra.mrb[8].mxu1 %vm718_vm1, %v3044_v7 }
  0x28   : > { %2659 = vmatpush3.bf16.msra.mxu1 %v2822_v16  ;;  %2662 = vmatprep.mubr.msk.bf16.mxu1 %vm2889_vm0, %v2888_v1 }
  0x29   : > { %2660 = vmatprep.subr.bf16.mxu1 %v2888_v1 }
  0x2a   : > { %2621 = vmatpush3.bf16.msra.mxu0 %v2821_v15 }
  0x2b   : > { %2634 = vmatprep.subr.bf16.mxu0 %v2888_v1 }
  0x2c   : > { %2661 = vmatpush3.bf16.msra.mxu1 %v2824_v17 }
  0x2d   : > { %2623 = vmatmul.mubr.msk.bf16.vlgmr.msra.gmra.mrb[12].mxu0 %vm718_vm1, %v3044_v7  ;;  %2674 = vmatprep.subr.bf16.mxu1 %v2888_v1 }
  0x2e   : > { %2635 = vmatpush3.bf16.msra.mxu0 %v2823_v18  ;;  %2638 = vmatprep.mubr.msk.bf16.mxu0 %vm2889_vm0, %v2888_v1 }
  0x2f   : > { %2636 = vmatprep.subr.bf16.mxu0 %v2888_v1  ;;  %2663 = vmatmul.mubr.msk.bf16.vlgmr.msra.gmra.mrb[12].mxu1 %vm718_vm1, %v3119_v19 }
  0x30   : > { %2675 = vmatpush3.bf16.msra.mxu1 %v2826_v20  ;;  %2678 = vmatprep.mubr.msk.bf16.mxu1 %vm2889_vm0, %v2888_v1 }
  0x31   : > { %2676 = vmatprep.subr.bf16.mxu1 %v2888_v1 }
  0x32   : > { %2637 = vmatpush3.bf16.msra.mxu0 %v2825_v21 }
  0x33   : > { %2650 = vmatprep.subr.bf16.mxu0 %v2888_v1 }
  0x34   : > { %2677 = vmatpush3.bf16.msra.mxu1 %v2828_v22 }
  0x35   : > { %2639 = vmatmul.mubr.msk.bf16.vlgmr.msra.gmra.mrb[16].mxu0 %vm718_vm1, %v3044_v7  ;;  %2688 = vmatprep.subr.bf16.mxu1 %v2888_v1 }
  0x36   : > { %2651 = vmatpush3.bf16.msra.mxu0 %v2827_v23  ;;  %2654 = vmatprep.mubr.msk.bf16.mxu0 %vm2889_vm0, %v2888_v1 }
  0x37   : > { %2652 = vmatprep.subr.bf16.mxu0 %v2888_v1  ;;  %2679 = vmatmul.mubr.msk.bf16.vlgmr.msra.gmra.mrb[16].mxu1 %vm718_vm1, %v3119_v19 }
  0x38   : > { %2690 = vmatprep.mubr.msk.bf16.mxu1 %vm2889_vm0, %v2888_v1 }
  0x3a   : > { %2653 = vmatpush3.bf16.msra.mxu0 %v2829_v24 }
  0x3b   : > { %2666 = vmatprep.subr.bf16.mxu0 %v2888_v1 }
  0x3d   : > { %2655 = vmatmul.mubr.msk.bf16.vlgmr.msra.gmra.mrb[20].mxu0 %vm718_vm1, %v3119_v19 }
  0x3e   : > { %2667 = vmatpush3.bf16.msra.mxu0 %v2830_v25  ;;  %2670 = vmatprep.mubr.msk.bf16.mxu0 %vm2889_vm0, %v2888_v1 }
  0x3f   : > { %2668 = vmatprep.subr.bf16.mxu0 %v2888_v1 }
  0x42   : > { %2669 = vmatpush3.bf16.msra.mxu0 %v2831_v26  ;;  %v2452_v26 = vld [vmem:[%s3393_s8 + $0x2] ss:$0 sm:$0xff] }
  0x43   : > { %2682 = vmatprep.subr.bf16.mxu0 %v2888_v1 }
  0x45   : > { %2671 = vmatmul.mubr.msk.bf16.vlgmr.msra.gmra.mrb[24].mxu0 %vm718_vm1, %v3119_v19 }
  0x46   : > { %2684 = vmatprep.mubr.msk.bf16.mxu0 %vm2889_vm0, %v2888_v1 }
  0xe8   : > { %v756_v28 = vpop.f32.mrb[0].mxu0  ;;  %v912_v33 = vpop.f32.mrb[0].mxu1 }
  0xe9   : > { %v757_v30 = vadd.f32 %v2434_v27, %v756_v28  ;;  %v2592_v31 = vpop.f32.mrb[1].mxu0  ;;  %v913_v36 = vadd.f32 %v2437_v29, %v912_v33  ;;  %v2616_v37 = vpop.f32.mrb[1].mxu1 }
  0xea   : > { %v759_v32 = vpop.f32.mrb[2].mxu0  ;;  %v915_v38 = vpop.f32.mrb[2].mxu1 }
  0xeb   : > { %v1170_v34 = vpack.c.bf16 %v757_v30, %v757_v30  ;;  %v2593_v35 = vpop.f32.mrb[3].mxu0  ;;  %v1173_v39 = vpack.c.bf16 %v913_v36, %v913_v36  ;;  %v2617_v40 = vpop.f32.mrb[3].mxu1  ;;  %v2469_v30 = vld [vmem:[%s3391_s6 + $0x3] ss:$0 sm:$0xff] }
  0xed   : > { %1175 = vst.msk [vmem:[#allocation2] sm:$0xf] %vm1174_vm2, %v1170_v34  ;;  %1178 = vst.msk [vmem:[#allocation2 + $0xc] sm:$0xf] %vm1174_vm2, %v1173_v39 }
  0xf0   : > { %v808_v42 = vpop.f32.mrb[4].mxu0 }
  0xf1   : > { %v809_v44 = vadd.f32 %v2435_v41, %v808_v42  ;;  %v2600_v45 = vpop.f32.mrb[5].mxu0 }
  0xf2   : > { %v811_v46 = vpop.f32.mrb[6].mxu0  ;;  %v1060_v47 = vpop.f32.mrb[4].mxu1 }
  0xf3   : > { %v1171_v48 = vpack.c.bf16 %v809_v44, %v809_v44  ;;  %v2601_v49 = vpop.f32.mrb[7].mxu0  ;;  %v1061_v50 = vadd.f32 %v2451_v43, %v1060_v47  ;;  %v2632_v51 = vpop.f32.mrb[5].mxu1  ;;  %v2466_v43 = vld [vmem:[%s3391_s6] ss:$0 sm:$0xff] }
  0xf4   : > { %v1452_v52 = vld [vmem:[#allocation2] sm:$0xf]  ;;  %v1063_v53 = vpop.f32.mrb[6].mxu1  ;;  %v1455_v23 = vld [vmem:[#allocation2 + $0xc] sm:$0xf] }
  0xf5   : > { %1176 = vst.msk [vmem:[#allocation2 + $0x4] sm:$0xf] %vm1174_vm2, %v1171_v48  ;;  %v1467_v54 = vsel %vm1462_vm3, %v1452_v52, 0  ;;  %v1180_v55 = vpack.c.bf16 %v1061_v50, %v1061_v50  ;;  %v2633_v56 = vpop.f32.mrb[7].mxu1  ;;  %v1605_v28 = vsel %vm1462_vm3, %v1455_v23, 0 }
  0xf6   : > { %2683 = vmatpush3.bf16.xpose.msra.mxu0 %v1467_v54  ;;  %v2468_v54 = vld [vmem:[%s3391_s6 + $0x2] ss:$0 sm:$0xff] }
  0xf7   : > { %1184 = vst.msk [vmem:[#allocation3 + $0x4] sm:$0xf] %vm1174_vm2, %v1180_v55  ;;  %2694 = vmatprep.subr.bf16.mxu0 %v2888_v1 }
  0xf8   : > { %v860_v58 = vpop.f32.mrb[8].mxu0 }
  0xf9   : > { %v861_v60 = vadd.f32 %v2436_v57, %v860_v58  ;;  %v2608_v61 = vpop.f32.mrb[9].mxu0 }
  0xfa   : > { %v863_v62 = vpop.f32.mrb[10].mxu0  ;;  %v1164_v63 = vpop.f32.mrb[8].mxu1 }
  0xfb   : > { %v1172_v0 = vpack.c.bf16 %v861_v60, %v861_v60  ;;  %v2609_v2 = vpop.f32.mrb[11].mxu0  ;;  %v1165_v3 = vadd.f32 %v2453_v59, %v1164_v63  ;;  %v2648_v4 = vpop.f32.mrb[9].mxu1 }
  0xfc   : > { %v1453_v5 = vld [vmem:[#allocation2 + $0x4] sm:$0xf]  ;;  %v1167_v6 = vpop.f32.mrb[10].mxu1  ;;  %v1457_v2 = vlaneseq }
  0xfd   : > { %1177 = vst.msk [vmem:[#allocation2 + $0x8] sm:$0xf] %vm1174_vm2, %v1172_v0  ;;  %v1513_v7 = vsel %vm1462_vm3, %v1453_v5, 0  ;;  %v1182_v8 = vpack.c.bf16 %v1165_v3, %v1165_v3  ;;  %v2649_v9 = vpop.f32.mrb[11].mxu1  ;;  %v654_v3 = vld [vmem:[%s636_s29] sm:$0x1] }
  0xfe   : > { %2689 = vmatpush3.bf16.xpose.msra.mxu1 %v1513_v7  ;;  %v1696_v39 = vld [vmem:[#allocation3 + $0x4] sm:$0xf]  ;;  %v655_v7 = vsub.f32 1.0, %v654_v3 }
  0xff   : > { %1186 = vst.msk [vmem:[#allocation3 + $0xc] sm:$0xf] %vm1174_vm2, %v1182_v8  ;;  %2700 = vmatprep.subr.bf16.mxu1 %v2888_v1  ;;  %v1750_v45 = vsel %vm1702_vm4, %v1696_v39, 0  ;;  %v1458_v8 = vshrl.u32 %v1457_v2, 7 }
 0x100   : > { %v1008_v11 = vpop.f32.mrb[12].mxu0 }
 0x101   : > { %v1009_v13 = vadd.f32 %v2450_v10, %v1008_v11  ;;  %v2624_v14 = vpop.f32.mrb[13].mxu0  ;;  %v656_v10 = vmul.f32 -10000.0, %v655_v7  ;;  %v1459_v11 = vsub.s32 0, %v1458_v8 }
 0x102   : > { %v1011_v15 = vpop.f32.mrb[14].mxu0  ;;  %v1334_v16 = vpop.f32.mrb[12].mxu1 }
 0x103   : > { %v1179_v17 = vpack.c.bf16 %v1009_v13, %v1009_v13  ;;  %v2625_v18 = vpop.f32.mrb[15].mxu0  ;;  %v1335_v20 = vadd.f32 %v2467_v12, %v1334_v16  ;;  %v2664_v21 = vpop.f32.mrb[13].mxu1  ;;  %v1460_v15 = vrot.slane %v656_v10, %v1459_v11 }
 0x104   : > { %v1337_v22 = vpop.f32.mrb[14].mxu1  ;;  %v1454_v52 = vld [vmem:[#allocation2 + $0x8] sm:$0xf] }
 0x105   : > { %1183 = vst.msk [vmem:[#allocation3] sm:$0xf] %vm1174_vm2, %v1179_v17  ;;  %v1445_v24 = vmul.f32 0.35355338, %v1335_v20  ;;  %v2665_v25 = vpop.f32.mrb[15].mxu1  ;;  %v1559_v55 = vsel %vm1462_vm3, %v1454_v52, 0 }
 0x106   : > { %v1698_v2 = vld [vmem:[#allocation3 + $0xc] sm:$0xf] }
 0x107   : > { %v1449_v27 = vpack.c.bf16 %v1445_v24, %v1445_v24  ;;  %v1842_v7 = vsel %vm1702_vm4, %v1698_v2, 0 }
 0x108   : > { %v1112_v29 = vpop.f32.mrb[16].mxu0 }
 0x109   : > { %v1113_v31 = vadd.f32 %v2452_v26, %v1112_v29  ;;  %v2640_v32 = vpop.f32.mrb[17].mxu0  ;;  %2691 = vmatmul.mubr.msk.bf16.vlgmr.msra.gmra.mrb[20].mxu1 %vm1462_vm3, %v1449_v27 }
 0x10a   : > { %v1115_v33 = vpop.f32.mrb[18].mxu0  ;;  %2701 = vmatpush3.bf16.xpose.msra.mxu1 %v1605_v28  ;;  %v1438_v34 = vpop.f32.mrb[16].mxu1  ;;  %2702 = vmatprep.mubr.msk.bf16.mxu1 %vm2889_vm0, %v2888_v1 }
 0x10b   : > { %v1181_v35 = vpack.c.bf16 %v1113_v31, %v1113_v31  ;;  %v2641_v36 = vpop.f32.mrb[19].mxu0  ;;  %v1439_v37 = vadd.f32 %v2469_v30, %v1438_v34  ;;  %2712 = vmatprep.subr.bf16.mxu1 %v2888_v1  ;;  %v2680_v38 = vpop.f32.mrb[17].mxu1 }
 0x10c   : > { %v1441_v40 = vpop.f32.mrb[18].mxu1  ;;  %v1695_v62 = vld [vmem:[#allocation3] sm:$0xf] }
 0x10d   : > { %1185 = vst.msk [vmem:[#allocation3 + $0x8] sm:$0xf] %vm1174_vm2, %v1181_v35  ;;  %v1447_v41 = vmul.f32 0.35355338, %v1439_v37  ;;  %v2681_v42 = vpop.f32.mrb[19].mxu1  ;;  %v1704_v0 = vsel %vm1702_vm4, %v1695_v62, 0 }
 0x10f   : > { %v1451_v44 = vpack.c.bf16 %v1447_v41, %v1447_v41 }
 0x110   : > { %v1282_v46 = vpop.f32.mrb[20].mxu0 }
 0x111   : > { %v1283_v47 = vadd.f32 %v2466_v43, %v1282_v46  ;;  %v2656_v48 = vpop.f32.mrb[21].mxu0  ;;  %2703 = vmatmul.mubr.msk.bf16.vlgmr.msra.gmra.mrb[24].mxu1 %vm1462_vm3, %v1451_v44 }
 0x112   : > { %v1285_v49 = vpop.f32.mrb[22].mxu0  ;;  %2713 = vmatpush3.bf16.msra.mxu1 %v1750_v45  ;;  %2714 = vmatprep.mubr.msk.bf16.mxu1 %vm2889_vm0, %v2888_v1 }
 0x113   : > { %v1444_v50 = vmul.f32 0.35355338, %v1283_v47  ;;  %v2657_v51 = vpop.f32.mrb[23].mxu0  ;;  %2724 = vmatprep.subr.bf16.mxu1 %v2888_v1 }
 0x115   : > { %v1448_v53 = vpack.c.bf16 %v1444_v50, %v1444_v50 }
 0x117   : > { %2685 = vmatmul.mubr.msk.bf16.vlgmr.msra.gmra.mrb[28].mxu0 %vm1462_vm3, %v1448_v53 }
 0x118   : > { %2695 = vmatpush3.bf16.xpose.msra.mxu0 %v1559_v55  ;;  %v1386_v56 = vpop.f32.mrb[24].mxu0  ;;  %2696 = vmatprep.mubr.msk.bf16.mxu0 %vm2889_vm0, %v2888_v1 }
 0x119   : > { %v1387_v57 = vadd.f32 %v2468_v54, %v1386_v56  ;;  %v2672_v58 = vpop.f32.mrb[25].mxu0  ;;  %2706 = vmatprep.subr.bf16.mxu0 %v2888_v1 }
 0x11a   : > { %v1389_v59 = vpop.f32.mrb[26].mxu0 }
 0x11b   : > { %v1446_v60 = vmul.f32 0.35355338, %v1387_v57  ;;  %v2673_v61 = vpop.f32.mrb[27].mxu0 }
 0x11d   : > { %v1450_v63 = vpack.c.bf16 %v1446_v60, %v1446_v60  ;;  %v1697_v60 = vld [vmem:[#allocation3 + $0x8] sm:$0xf] }
 0x11f   : > { %2697 = vmatmul.mubr.msk.bf16.vlgmr.msra.gmra.mrb[32].mxu0 %vm1462_vm3, %v1450_v63 }
 0x120   : > { %2707 = vmatpush3.bf16.msra.mxu0 %v1704_v0  ;;  %2708 = vmatprep.mubr.msk.bf16.mxu0 %vm2889_vm0, %v2888_v1  ;;  %v1796_v0 = vsel %vm1702_vm4, %v1697_v60, 0 }
 0x121   : > { %2718 = vmatprep.subr.bf16.mxu0 %v2888_v1 }
 0x1dc   : > { %v1549_v4 = vpop.f32.mrb[20].mxu1 }
 0x1dd   : > { %v2692_v5 = vpop.f32.mrb[21].mxu1  ;;  %v1550_v21 = vadd.f32 %v1549_v4, %v1460_v15 }
 0x1de   : > { %v1552_v6 = vpop.f32.mrb[22].mxu1  ;;  %v1888_v5 = vld [vmem:[%s3394_s9] sm:$0xf] }
 0x1df   : > { %v2693_v9 = vpop.f32.mrb[23].mxu1  ;;  %v1650_v25 = vsel %vm1462_vm3, %v1550_v21, -inf }
 0x1e0   : > { %v1896_v9 = vsel %vm1702_vm4, %v1888_v5, 0 }
 0x1e4   : > { %v1641_v12 = vpop.f32.mrb[24].mxu1 }
 0x1e5   : > { %v2704_v13 = vpop.f32.mrb[25].mxu1  ;;  %v1642_v29 = vadd.f32 %v1641_v12, %v1460_v15 }
 0x1e6   : > { %v1644_v14 = vpop.f32.mrb[26].mxu1  ;;  %v1889_v13 = vld [vmem:[%s3394_s9 + $0x4] sm:$0xf] }
 0x1e7   : > { %v2705_v16 = vpop.f32.mrb[27].mxu1  ;;  %v1656_v33 = vsel %vm1462_vm3, %v1642_v29, -inf  ;;  %v1942_v14 = vsel %vm1702_vm4, %v1889_v13, 0  ;;  %v2836_v13 = vld [vmem:[%s3400_s15 + $0x10] sm:$0xff]  }
 0x1ea   : > { %v1503_v17 = vpop.f32.mrb[28].mxu0 }
 0x1eb   : > { %v1504_v18 = vadd.f32 %v1503_v17, %v1460_v15  ;;  %v2686_v20 = vpop.f32.mrb[29].mxu0 }
 0x1ec   : > { %v1506_v22 = vpop.f32.mrb[30].mxu0 }
 0x1ed   : > { %v2687_v23 = vpop.f32.mrb[31].mxu0  ;;  %v1647_v24 = vsel %vm1462_vm3, %v1504_v18, -inf  ;;  %v1891_v22 = vld [vmem:[%s3394_s9 + $0xc] sm:$0xf] }
 0x1ee   : > { %1648 = vmax.xlane.f32.xlu0 %v1647_v24 }
 0x1f2   : > { %v1595_v26 = vpop.f32.mrb[32].mxu0  ;;  %1651 = vmax.xlane.f32.xlu0 %v1650_v25 }
 0x1f3   : > { %v1596_v27 = vadd.f32 %v1595_v26, %v1460_v15  ;;  %v2698_v28 = vpop.f32.mrb[33].mxu0  ;;  %v1890_v15 = vld [vmem:[%s3394_s9 + $0x8] sm:$0xf] }
 0x1f4   : > { %v1598_v30 = vpop.f32.mrb[34].mxu0  ;;  %v1988_v20 = vsel %vm1702_vm4, %v1890_v15, 0 }
 0x1f5   : > { %v2699_v31 = vpop.f32.mrb[35].mxu0  ;;  %v1653_v32 = vsel %vm1462_vm3, %v1596_v27, -inf }
 0x1f6   : > { %1654 = vmax.xlane.f32.xlu1 %v1653_v32 }
 0x1fa   : > { %1657 = vmax.xlane.f32.xlu1 %v1656_v33 }
 0x27b   : > { %v1649_v34 = vpop.xlane.xlu0 %1648 }
 0x27c   : > { %v1659_v35 = vsub.f32 %v1504_v18, %v1649_v34 }
 0x27e   : > { %v1663_v36 = vmul.f32 1.442695, %v1659_v35 }
 0x27f   : > { %v1652_v37 = vpop.xlane.xlu0 %1651 }
 0x280   : > { %2842 = vpow2.f32 %v1663_v36  ;;  %v1660_v38 = vsub.f32 %v1550_v21, %v1652_v37 }
 0x282   : > { %v1665_v39 = vmul.f32 1.442695, %v1660_v38 }
 0x283   : > { %v1655_v40 = vpop.xlane.xlu1 %1654 }
 0x284   : > { %2844 = vpow2.f32 %v1665_v39  ;;  %v1661_v41 = vsub.f32 %v1596_v27, %v1655_v40  ;;  %v2034_v27 = vsel %vm1702_vm4, %v1891_v22, 0 }
 0x286   : > { %v1667_v42 = vmul.f32 1.442695, %v1661_v41 }
 0x287   : > { %v1658_v43 = vpop.xlane.xlu1 %1657 }
 0x288   : > { %2846 = vpow2.f32 %v1667_v42  ;;  %v1662_v44 = vsub.f32 %v1642_v29, %v1658_v43 }
 0x28a   : > { %v2843_v45 = vpop.eup %2842  ;;  %v1669_v46 = vmul.f32 1.442695, %v1662_v44 }
 0x28b   : > { %v1671_v47 = vsel %vm1462_vm3, %v2843_v45, 0.0 }
 0x28c   : > { %2848 = vpow2.f32 %v1669_v46  ;;  %1672 = vadd.xlane.f32.xlu0 %v1671_v47 }
 0x28e   : > { %v2845_v48 = vpop.eup %2844 }
 0x28f   : > { %v1674_v49 = vsel %vm1462_vm3, %v2845_v48, 0.0 }
 0x290   : > { %1675 = vadd.xlane.f32.xlu1 %v1674_v49 }
 0x292   : > { %v2847_v50 = vpop.eup %2846 }
 0x293   : > { %v1677_v51 = vsel %vm1462_vm3, %v2847_v50, 0.0 }
 0x294   : > { %1678 = vadd.xlane.f32.xlu0 %v1677_v51 }
 0x296   : > { %v2849_v52 = vpop.eup %2848 }
 0x297   : > { %v1680_v53 = vsel %vm1462_vm3, %v2849_v52, 0.0 }
 0x298   : > { %1681 = vadd.xlane.f32.xlu1 %v1680_v53 }
 0x319   : > { %v1673_v54 = vpop.xlane.xlu0 %1672 }
 0x31a   : > { %2850 = vrcp.f32 %v1673_v54 }
 0x31d   : > { %v1676_v55 = vpop.xlane.xlu1 %1675 }
 0x31e   : > { %2852 = vrcp.f32 %v1676_v55 }
 0x321   : > { %v1679_v56 = vpop.xlane.xlu0 %1678 }
 0x322   : > { %2854 = vrcp.f32 %v1679_v56 }
 0x324   : > { %v2851_v57 = vpop.eup %2850 }
 0x325   : > { %v1687_v58 = vmul.f32 %v2851_v57, %v2843_v45  ;;  %v1682_v59 = vpop.xlane.xlu1 %1681 }
 0x326   : > { %2856 = vrcp.f32 %v1682_v59  ;;  %v2494_v59 = vld [vmem:[%s3395_s10] ss:$0 sm:$0xff] }
 0x327   : > { %v1691_v61 = vpack.c.bf16 %v1687_v58, %v1687_v58 }
 0x328   : > { %v2853_v62 = vpop.eup %2852 }
 0x329   : > { %v1688_v63 = vmul.f32 %v2853_v62, %v2845_v48  ;;  %2709 = vmatmul.mubr.msk.bf16.vlgmr.msra.gmra.mrb[36].mxu0 %vm1462_vm3, %v1691_v61 }
 0x32a   : > { %2719 = vmatpush3.bf16.msra.mxu0 %v1796_v0  ;;  %2720 = vmatprep.mubr.msk.bf16.mxu0 %vm2889_vm0, %v2888_v1 }
 0x32b   : > { %v1692_v3 = vpack.c.bf16 %v1688_v63, %v1688_v63  ;;  %2730 = vmatprep.subr.bf16.mxu0 %v2888_v1  ;;  %v2091_v63 = vunpack.c.l.bf16 %v3119_v19  ;;  %v2833_v19 = vld [vmem:[%s3398_s13 + $0x8] sm:$0xff]  }
 0x32c   : > { %v2855_v4 = vpop.eup %2854 }
 0x32d   : > { %v1689_v6 = vmul.f32 %v2855_v4, %v2847_v50  ;;  %2715 = vmatmul.mubr.msk.bf16.vlgmr.msra.gmra.mrb[28].mxu1 %vm1462_vm3, %v1692_v3 }
 0x32e   : > { %2725 = vmatpush3.bf16.msra.mxu1 %v1842_v7  ;;  %2726 = vmatprep.mubr.msk.bf16.mxu1 %vm2889_vm0, %v2888_v1 }
 0x32f   : > { %v1693_v8 = vpack.c.bf16 %v1689_v6, %v1689_v6  ;;  %2736 = vmatprep.subr.bf16.mxu1 %v2888_v1 }
 0x330   : > { %v2857_v10 = vpop.eup %2856 }
 0x331   : > { %v1690_v11 = vmul.f32 %v2857_v10, %v2849_v52  ;;  %2721 = vmatmul.mubr.msk.bf16.vlgmr.msra.gmra.mrb[40].mxu0 %vm1462_vm3, %v1693_v8  ;;  %v2832_v10 = vld [vmem:[%s3398_s13] sm:$0xff]  }
 0x332   : > { %2731 = vmatpush3.bf16.msra.mxu0 %v1896_v9  ;;  %2732 = vmatprep.mubr.msk.bf16.mxu0 %vm2889_vm0, %v2888_v1 }
 0x333   : > { %v1694_v12 = vpack.c.bf16 %v1690_v11, %v1690_v11  ;;  %2742 = vmatprep.subr.bf16.mxu0 %v2888_v1  ;;  %v2834_v11 = vld [vmem:[%s3400_s15] sm:$0xff]  }
 0x335   : > { %2727 = vmatmul.mubr.msk.bf16.vlgmr.msra.gmra.mrb[32].mxu1 %vm1462_vm3, %v1694_v12  ;;  %v2835_v12 = vld [vmem:[%s3400_s15 + $0x8] sm:$0xff]  }
 0x336   : > { %2738 = vmatprep.mubr.msk.bf16.mxu1 %vm2889_vm0, %v2888_v1  ;;  %2737 = vmatpush3.bf16.msra.mxu1 %v1942_v14 }
 0x337   : > { %2748 = vmatprep.subr.bf16.mxu1 %v2888_v1 }
 0x3fc   : > { %v1740_v16 = vpop.f32.mrb[36].mxu0 }
 0x3fd   : > { %v1884_v17 = vpack.c.bf16 %v1740_v16, %v1740_v16  ;;  %v2710_v18 = vpop.f32.mrb[37].mxu0 }
 0x3fe   : > { %v1743_v21 = vpop.f32.mrb[38].mxu0  ;;  %v2495_v18 = vld [vmem:[%s3396_s11] ss:$0 sm:$0xff] }
 0x3ff   : > { %v2711_v23 = vpop.f32.mrb[39].mxu0  ;;  %2733 = vmatmul.mubr.msk.bf16.vlgmr.msra.gmra.mrb[44].mxu0 %vm1462_vm3, %v1884_v17  ;;  %v2496_v21 = vld [vmem:[%s3397_s12] ss:$0 sm:$0xff] }
 0x400   : > { %v1786_v24 = vpop.f32.mrb[28].mxu1  ;;  %2743 = vmatpush3.bf16.msra.mxu0 %v1988_v20  ;;  %2744 = vmatprep.mubr.msk.bf16.mxu0 %vm2889_vm0, %v2888_v1 }
 0x401   : > { %v1885_v25 = vpack.c.bf16 %v1786_v24, %v1786_v24  ;;  %v2716_v26 = vpop.f32.mrb[29].mxu1  ;;  %2754 = vmatprep.subr.bf16.mxu0 %v2888_v1 }
 0x402   : > { %v1789_v28 = vpop.f32.mrb[30].mxu1  ;;  %v2838_v26 = vld [vmem:[%s3400_s15 + $0x20] sm:$0xff]  }
 0x403   : > { %v2717_v29 = vpop.f32.mrb[31].mxu1  ;;  %2739 = vmatmul.mubr.msk.bf16.vlgmr.msra.gmra.mrb[36].mxu1 %vm1462_vm3, %v1885_v25  ;;  %v2837_v25 = vld [vmem:[%s3400_s15 + $0x18] sm:$0xff]   ;;  %v2840_v28 = vld [vmem:[%s3400_s15 + $0x30] sm:$0xff]  }
 0x404   : > { %v1832_v30 = vpop.f32.mrb[40].mxu0  ;;  %2749 = vmatpush3.bf16.msra.mxu1 %v2034_v27  ;;  %2750 = vmatprep.mubr.msk.bf16.mxu1 %vm2889_vm0, %v2888_v1  ;;  %v2839_v27 = vld [vmem:[%s3400_s15 + $0x28] sm:$0xff]   ;;  %v2841_v29 = vld [vmem:[%s3400_s15 + $0x38] sm:$0xff]  }
 0x405   : > { %v1886_v31 = vpack.c.bf16 %v1832_v30, %v1832_v30  ;;  %v2722_v32 = vpop.f32.mrb[41].mxu0  ;;  %2762 = vmatprep.subr.bf16.mxu1 %v2888_v1  ;;  %v2497_v30 = vld [vmem:[%s3399_s14] ss:$0 sm:$0xff] }
 0x406   : > { %v1835_v33 = vpop.f32.mrb[42].mxu0 }
 0x407   : > { %v2723_v34 = vpop.f32.mrb[43].mxu0  ;;  %2745 = vmatmul.mubr.msk.bf16.vlgmr.msra.gmra.mrb[48].mxu0 %vm1462_vm3, %v1886_v31 }
 0x408   : > { %v1878_v35 = vpop.f32.mrb[32].mxu1  ;;  %2758 = vmatprep.mubr.msk.bf16.mxu0 %vm2889_vm0, %v2888_v1  ;;  %2755 = vmatpush3.bf16.msra.mxu0 %v2832_v10 }
 0x409   : > { %v1887_v36 = vpack.c.bf16 %v1878_v35, %v1878_v35  ;;  %v2728_v37 = vpop.f32.mrb[33].mxu1  ;;  %2756 = vmatprep.subr.bf16.mxu0 %v2888_v1 }
 0x40a   : > { %v1881_v38 = vpop.f32.mrb[34].mxu1 }
 0x40b   : > { %v2729_v39 = vpop.f32.mrb[35].mxu1  ;;  %2751 = vmatmul.mubr.msk.bf16.vlgmr.msra.gmra.mrb[40].mxu1 %vm1462_vm3, %v1887_v36 }
 0x40c   : > { %2778 = vmatprep.mubr.msk.bf16.mxu1 %vm2889_vm0, %v2888_v1  ;;  %2757 = vmatpush3.bf16.msra.mxu0 %v2833_v19 }
 0x40d   : > { %2763 = vmatpush3.bf16.msra.mxu1 %v2834_v11 }
 0x40e   : > { %2764 = vmatprep.subr.bf16.mxu1 %v2888_v1 }
 0x411   : > { %2765 = vmatpush3.bf16.msra.mxu1 %v2835_v12 }
 0x412   : > { %2766 = vmatprep.subr.bf16.mxu1 %v2888_v1 }
 0x415   : > { %2767 = vmatpush3.bf16.msra.mxu1 %v2836_v13 }
 0x416   : > { %2768 = vmatprep.subr.bf16.mxu1 %v2888_v1 }
 0x419   : > { %2769 = vmatpush3.bf16.msra.mxu1 %v2837_v25 }
 0x41a   : > { %2770 = vmatprep.subr.bf16.mxu1 %v2888_v1 }
 0x41d   : > { %2771 = vmatpush3.bf16.msra.mxu1 %v2838_v26 }
 0x41e   : > { %2772 = vmatprep.subr.bf16.mxu1 %v2888_v1 }
 0x421   : > { %2773 = vmatpush3.bf16.msra.mxu1 %v2839_v27 }
 0x422   : > { %2774 = vmatprep.subr.bf16.mxu1 %v2888_v1 }
 0x425   : > { %2775 = vmatpush3.bf16.msra.mxu1 %v2840_v28 }
 0x426   : > { %2776 = vmatprep.subr.bf16.mxu1 %v2888_v1 }
 0x429   : > { %2777 = vmatpush3.bf16.msra.mxu1 %v2841_v29 }
 0x4d2   : > { %v1932_v40 = vpop.f32.mrb[44].mxu0 }
 0x4d3   : > { %v2734_v41 = vpop.f32.mrb[45].mxu0  ;;  %v2076_v45 = vsel %vm718_vm1, %v1932_v40, 0.0 }
 0x4d4   : > { %v1935_v42 = vpop.f32.mrb[46].mxu0  ;;  %v2501_v41 = vld [vmem:[%s3401_s16] ss:$0 sm:$0xff] }
 0x4d5   : > { %v2735_v43 = vpop.f32.mrb[47].mxu0 }
 0x4d6   : > { %v1978_v44 = vpop.f32.mrb[36].mxu1 }
 0x4d7   : > { %v2077_v46 = vsel %vm718_vm1, %v1978_v44, 0.0  ;;  %v2740_v47 = vpop.f32.mrb[37].mxu1 }
 0x4d8   : > { %v2078_v48 = vadd.f32 %v2077_v46, %v2076_v45  ;;  %v1981_v49 = vpop.f32.mrb[38].mxu1 }
 0x4d9   : > { %v2741_v50 = vpop.f32.mrb[39].mxu1 }
 0x4da   : > { %v2024_v51 = vpop.f32.mrb[48].mxu0 }
 0x4db   : > { %v2079_v52 = vsel %vm718_vm1, %v2024_v51, 0.0  ;;  %v2746_v53 = vpop.f32.mrb[49].mxu0 }
 0x4dc   : > { %v2080_v54 = vadd.f32 %v2079_v52, %v2078_v48  ;;  %v2027_v55 = vpop.f32.mrb[50].mxu0 }
 0x4dd   : > { %v2747_v56 = vpop.f32.mrb[51].mxu0 }
 0x4de   : > { %v2070_v57 = vpop.f32.mrb[40].mxu1 }
 0x4df   : > { %v2081_v58 = vsel %vm718_vm1, %v2070_v57, 0.0  ;;  %v2752_v60 = vpop.f32.mrb[41].mxu1 }
 0x4e0   : > { %v2082_v61 = vadd.f32 %v2081_v58, %v2080_v54  ;;  %v2073_v62 = vpop.f32.mrb[42].mxu1  ;;  %v2510_v58 = vld [vmem:[%s3402_s17] ss:$0 sm:$0xff] }
 0x4e1   : > { %v2753_v0 = vpop.f32.mrb[43].mxu1  ;;  %v2511_v60 = vld [vmem:[%s3403_s18] ss:$0 sm:$0xff] }
 0x4e2   : > { %v2090_v2 = vadd.f32 %v2494_v59, %v2082_v61 }
 0x4e4   : > { %v2092_v3 = vadd.f32 %v2091_v63, %v2090_v2 }
 0x4e6   : > { %v2095_v4 = vsel %vm718_vm1, %v2092_v3, 0.0 }
 0x4e7   : > { %2096 = vadd.xlane.f32.xlu0 %v2095_v4 }
 0x574   : > { %v2097_v5 = vpop.xlane.xlu0 %2096 }
 0x575   : > { %v2099_v6 = vmul.f32 0.03125, %v2097_v5 }
 0x577   : > { %v2100_v7 = vsub.f32 %v2092_v3, %v2099_v6 }
 0x579   : > { %v2101_v8 = vmul.f32 %v2100_v7, %v2100_v7 }
 0x57b   : > { %v2102_v9 = vsel %vm718_vm1, %v2101_v8, 0.0 }
 0x57c   : > { %2103 = vadd.xlane.f32.xlu1 %v2102_v9 }
 0x609   : > { %v2104_v14 = vpop.xlane.xlu1 %2103 }
 0x60a   : > { %v2105_v15 = vmul.f32 0.03125, %v2104_v14 }
 0x60c   : > { %v2106_v16 = vadd.f32 1e-12, %v2105_v15 }
 0x60e   : > { %2858 = vrsqrt.f32 %v2106_v16 }
 0x618   : > { %v2859_v17 = vpop.eup %2858 }
 0x619   : > { %v2108_v20 = vmul.f32 %v2859_v17, %v2100_v7 }
 0x61b   : > { %v2115_v22 = vmul.f32 %v2495_v18, %v2108_v20 }
 0x61d   : > { %v2122_v23 = vadd.f32 %v2496_v21, %v2115_v22 }
 0x61f   : > { %v2123_v24 = vpack.c.bf16 %v2122_v23, %v2122_v23 }
 0x621   : > { %2759 = vmatmul.mubr.msk.bf16.vlgmr.msra.gmra.mrb[52].mxu0 %vm718_vm1, %v2123_v24 }
 0x6f4   : > { %v2184_v31 = vpop.f32.mrb[52].mxu0 }
 0x6f5   : > { %v2185_v32 = vadd.f32 %v2497_v30, %v2184_v31  ;;  %v2760_v33 = vpop.f32.mrb[53].mxu0 }
 0x6f6   : > { %v2187_v34 = vpop.f32.mrb[54].mxu0 }
 0x6f7   : > { %v2191_v35 = vmul.f32 0.70710677, %v2185_v32  ;;  %v2761_v36 = vpop.f32.mrb[55].mxu0  ;;  %v2190_v38 = vmul.f32 0.5, %v2185_v32 }
 0x6f9   : > { %2860 = verf.f32 %v2191_v35 }
 0x703   : > { %v2861_v37 = vpop.eup %2860 }
 0x704   : > { %v2193_v39 = vadd.f32 1.0, %v2861_v37 }
 0x706   : > { %v2194_v1 = vmul.f32 %v2193_v39, %v2190_v38 }
 0x708   : > { %v2195_v40 = vpack.c.bf16 %v2194_v1, %v2194_v1 }
 0x70a   : > { %2779 = vmatmul.mubr.bf16.vlgmr.msra.gmra.mrb[44].mxu1 %v2195_v40 }
 0x7dd   : > { %v2301_v42 = vpop.f32.mrb[44].mxu1 }
 0x7de   : > { %v2302_v43 = vadd.f32 %v2501_v41, %v2301_v42  ;;  %v2780_v44 = vpop.f32.mrb[45].mxu1 }
 0x7df   : > { %v2304_v45 = vpop.f32.mrb[46].mxu1 }
 0x7e0   : > { %v2781_v46 = vpop.f32.mrb[47].mxu1  ;;  %v2307_v47 = vadd.f32 %v2302_v43, %v2122_v23 }
 0x7e2   : > { %v2310_v48 = vsel %vm718_vm1, %v2307_v47, 0.0 }
 0x7e3   : > { %2311 = vadd.xlane.f32.xlu0 %v2310_v48 }
 0x870   : > { %v2312_v49 = vpop.xlane.xlu0 %2311 }
 0x871   : > { %v2313_v50 = vmul.f32 0.03125, %v2312_v49 }
 0x873   : > { %v2314_v51 = vsub.f32 %v2307_v47, %v2313_v50 }
 0x875   : > { %v2315_v52 = vmul.f32 %v2314_v51, %v2314_v51 }
 0x877   : > { %v2316_v53 = vsel %vm718_vm1, %v2315_v52, 0.0 }
 0x878   : > { %2317 = vadd.xlane.f32.xlu1 %v2316_v53 }
 0x905   : > { %v2318_v54 = vpop.xlane.xlu1 %2317 }
 0x906   : > { %v2319_v55 = vmul.f32 0.03125, %v2318_v54 }
 0x908   : > { %v2320_v56 = vadd.f32 1e-12, %v2319_v55 }
 0x90a   : > { %2862 = vrsqrt.f32 %v2320_v56 }
 0x914   : > { %v2863_v57 = vpop.eup %2862 }
 0x915   : > { %v2322_v59 = vmul.f32 %v2863_v57, %v2314_v51 }
 0x917   : > { %v2329_v61 = vmul.f32 %v2510_v58, %v2322_v59 }
 0x919   : > { %v2336_v62 = vadd.f32 %v2511_v60, %v2329_v61 }
 0x91b   : > { %v2337_v63 = vpack.c.bf16 %v2336_v62, %v2336_v62 }
 0x91d   : > { %2339 = vst.msk [vmem:[%s651_s23] sm:$0xf] %vm2338_vm5, %v2337_v63 }
 0x91e PF: > { %s29_s20 = sadd.s32 1, %s2886_s20   ;;  %s3414_s0 = smov %s2882_s30 }
 0x91f   : > { %p26_p5 = scmp.ge.s32.totalorder %s29_s20, 4   ;;  %s3415_s30 = smov %s3417_s21 }
 0x921   :  { %28 = sbr.rel (!%p26_p5) target bundleno = 5 (0x5), region = 136 }

</bundles_post_ra>
